<compile_context>
chip_gen: v7x
topology: tpu7x:2x2x1
jax: 0.10.0
libtpu: 0.0.40
codegen_flags: <defaults>
</compile_context>

<pallas_src>
import functools

import jax
import jax.numpy as jnp
from jax.experimental import pallas as pl
from jax.experimental.pallas import tpu as pltpu


def circconv_kernel(x_ref, w_ref, b_ref, o_ref, *, n_adj):
    """Single-invocation kernel (no grid).

    x_ref : (B, Cin, L)      VMEM  activations, caller's native layout
    w_ref : (Cout*Cin*K,)    SMEM  conv weight, flattened row-major (co, ci, k)
    b_ref : (Cout,)          SMEM  conv bias
    o_ref : (B, Cout, L)     VMEM  output, caller's native layout
    """
    bsz, cin, length = x_ref.shape
    cout = o_ref.shape[1]
    ksz = 2 * n_adj + 1

    # f32 accumulators (one (B, 1, L) slab per output channel), seeded with bias.
    accs = [jnp.full((bsz, 1, length), b_ref[co], jnp.float32)
            for co in range(cout)]

    for ci in range(cin):
        row = x_ref[:, ci:ci + 1, :].astype(jnp.float32)          # (B, 1, L)
        for k in range(ksz):
            # Circular tap: tap[..., i] = row[..., (i + k - n_adj) mod L],
            # i.e. a static roll by (n_adj - k) built from the register-resident
            # row (no padded scratch, no VMEM round trip).
            s = (n_adj - k) % length
            if s == 0:
                tap = row
            else:
                tap = jnp.concatenate(
                    [row[..., length - s:], row[..., :length - s]], axis=-1)
            # Conv taps as unrolled scalar-broadcast FMAs on the VPU; at
            # Cin*K = 36, Cout = 4 the MXU would sit at <1% utilization.
            for co in range(cout):
                w = w_ref[(co * cin + ci) * ksz + k]              # SMEM scalar
                accs[co] = accs[co] + w * tap
    # TODO(synk): for larger Cout / B*L, switch the accs list to a single
    # stacked accumulator and bound live ranges with lax.fori_loop(unroll=True)
    # so the 64-vreg file does not spill.

    # TODO(synk): once L is tiled lane-dense (multiples of 128-512), fuse this
    # writeback into one unmasked store: o_ref[...] = concat(accs, axis=1).
    # At L = 16 every store is masked anyway and these 4 tiny stores are noise.
    for co in range(cout):
        o_ref[:, co:co + 1, :] = accs[co].astype(o_ref.dtype)


def circ_conv(x, weight, bias, n_adj):
    """Equivalent of CircConv.forward(input, adj); `adj` is unused by the
    reference PyTorch module, so it is not an argument here."""
    B, Cin, L = x.shape
    Cout, Cin_w, K = weight.shape
    assert Cin_w == Cin and K == 2 * n_adj + 1 and n_adj <= L

    # Scalar table for SMEM (144 floats here) — no activation copies in HBM.
    w_flat = weight.reshape(Cout * Cin * K)

    kernel = functools.partial(circconv_kernel, n_adj=n_adj)
    cost = pl.CostEstimate(
        flops=2 * B * Cout * Cin * K * L,
        transcendentals=0,
        bytes_accessed=int(x.size * x.dtype.itemsize
                           + weight.size * weight.dtype.itemsize
                           + bias.size * bias.dtype.itemsize
                           + B * Cout * L * x.dtype.itemsize),
    )

    out = pl.pallas_call(
        kernel,
        out_shape=jax.ShapeDtypeStruct((B, Cout, L), x.dtype),
        in_specs=[
            pl.BlockSpec(memory_space=pltpu.MemorySpace.VMEM),   # activations
            pl.BlockSpec(memory_space=pltpu.MemorySpace.SMEM),   # weights (scalars)
            pl.BlockSpec(memory_space=pltpu.MemorySpace.SMEM),   # bias (scalars)
        ],
        out_specs=pl.BlockSpec(memory_space=pltpu.MemorySpace.VMEM),
        cost_estimate=cost,
    )(x, w_flat, bias)

    # TODO(synk): for large B*L add a "parallel" grid axis over (B, L-tiles)
    # (>=512-lane L tiles, halo handled by rolling inside the tile) so both
    # v7x TensorCores are used, set pltpu.CompilerParams(vmem_limit_bytes=...)
    # against v7x's 64 MiB VMEM / v5e's 16 MiB scoped default, and only switch
    # to an im2col MXU matmul once Cin*K approaches the MXU edge and Cout>=128.
    return out


def _reference(x, weight, bias, n_adj):
    """Pure-JAX reference (circular pad + valid conv1d) for a correctness check."""
    x_pad = jnp.concatenate([x[..., -n_adj:], x, x[..., :n_adj]], axis=2)
    out = jax.lax.conv_general_dilated(
        x_pad, weight,
        window_strides=(1,),
        padding="VALID",
        dimension_numbers=("NCH", "OIH", "NCH"),
    )
    return out + bias[None, :, None]


if __name__ == "__main__":
    # Shapes consistent with CircConv(state_dim=4, n_adj=4) on a (B, C, L) input.
    B, C_in, C_out, L, n_adj = 2, 4, 4, 16, 4
    K = 2 * n_adj + 1

    key = jax.random.PRNGKey(0)
    kx, kw, kb = jax.random.split(key, 3)
    x = jax.random.normal(kx, (B, C_in, L), dtype=jnp.float32)
    # Deterministic synthetic parameters (Conv1d weight: (Cout, Cin, K), bias: (Cout,))
    weight = jax.random.normal(kw, (C_out, C_in, K), dtype=jnp.float32) * 0.1
    bias = jax.random.normal(kb, (C_out,), dtype=jnp.float32) * 0.1

    out = jax.block_until_ready(circ_conv(x, weight, bias, n_adj))
    ref = jax.block_until_ready(_reference(x, weight, bias, n_adj))

    assert out.shape == (B, C_out, L)
    assert jnp.allclose(out, ref, atol=1e-5, rtol=1e-5)

    print("KERNEL_OK")
</pallas_src>

<mosaic_0001>
module attributes {stable_mosaic.version = 11 : i64} {
  func.func @circconv_kernel(%arg0: memref<2x4x16xf32, #tpu.memory_space<vmem>>, %arg1: memref<144xf32, #tpu.memory_space<smem>>, %arg2: memref<4xf32, #tpu.memory_space<smem>>, %arg3: memref<2x4x16xf32, #tpu.memory_space<vmem>>) attributes {dimension_semantics = [], scalar_prefetch = 0 : i64, scratch_operands = 0 : i64, tpu.core_type = #tpu.core_type<tc>} {
    %c0 = arith.constant 0 : index
    %0 = memref.load %arg2[%c0] : memref<4xf32, #tpu.memory_space<smem>>
    %1 = vector.broadcast %0 : f32 to vector<2x1x16xf32>
    %c1 = arith.constant 1 : index
    %2 = memref.load %arg2[%c1] : memref<4xf32, #tpu.memory_space<smem>>
    %3 = vector.broadcast %2 : f32 to vector<2x1x16xf32>
    %c2 = arith.constant 2 : index
    %4 = memref.load %arg2[%c2] : memref<4xf32, #tpu.memory_space<smem>>
    %5 = vector.broadcast %4 : f32 to vector<2x1x16xf32>
    %c3 = arith.constant 3 : index
    %6 = memref.load %arg2[%c3] : memref<4xf32, #tpu.memory_space<smem>>
    %7 = vector.broadcast %6 : f32 to vector<2x1x16xf32>
    %c0_0 = arith.constant 0 : index
    %c0_1 = arith.constant 0 : index
    %c0_2 = arith.constant 0 : index
    %8 = vector.load %arg0[%c0_0, %c0_1, %c0_2] : memref<2x4x16xf32, #tpu.memory_space<vmem>>, vector<2x1x16xf32>
    %9 = vector.extract_strided_slice %8 {offsets = [0, 0, 12], sizes = [2, 1, 4], strides = [1, 1, 1]} : vector<2x1x16xf32> to vector<2x1x4xf32>
    %10 = vector.extract_strided_slice %8 {offsets = [0, 0, 0], sizes = [2, 1, 12], strides = [1, 1, 1]} : vector<2x1x16xf32> to vector<2x1x12xf32>
    %11 = tpu.concatenate %9, %10 in 2 : vector<2x1x4xf32>, vector<2x1x12xf32> -> vector<2x1x16xf32>
    %c0_3 = arith.constant 0 : index
    %12 = memref.load %arg1[%c0_3] : memref<144xf32, #tpu.memory_space<smem>>
    %13 = vector.broadcast %12 : f32 to vector<2x1x16xf32>
    %14 = arith.mulf %13, %11 : vector<2x1x16xf32>
    %15 = arith.addf %1, %14 : vector<2x1x16xf32>
    %c36 = arith.constant 36 : index
    %16 = memref.load %arg1[%c36] : memref<144xf32, #tpu.memory_space<smem>>
    %17 = vector.broadcast %16 : f32 to vector<2x1x16xf32>
    %18 = arith.mulf %17, %11 : vector<2x1x16xf32>
    %19 = arith.addf %3, %18 : vector<2x1x16xf32>
    %c72 = arith.constant 72 : index
    %20 = memref.load %arg1[%c72] : memref<144xf32, #tpu.memory_space<smem>>
    %21 = vector.broadcast %20 : f32 to vector<2x1x16xf32>
    %22 = arith.mulf %21, %11 : vector<2x1x16xf32>
    %23 = arith.addf %5, %22 : vector<2x1x16xf32>
    %c108 = arith.constant 108 : index
    %24 = memref.load %arg1[%c108] : memref<144xf32, #tpu.memory_space<smem>>
    %25 = vector.broadcast %24 : f32 to vector<2x1x16xf32>
    %26 = arith.mulf %25, %11 : vector<2x1x16xf32>
    %27 = arith.addf %7, %26 : vector<2x1x16xf32>
    %28 = vector.extract_strided_slice %8 {offsets = [0, 0, 13], sizes = [2, 1, 3], strides = [1, 1, 1]} : vector<2x1x16xf32> to vector<2x1x3xf32>
    %29 = vector.extract_strided_slice %8 {offsets = [0, 0, 0], sizes = [2, 1, 13], strides = [1, 1, 1]} : vector<2x1x16xf32> to vector<2x1x13xf32>
    %30 = tpu.concatenate %28, %29 in 2 : vector<2x1x3xf32>, vector<2x1x13xf32> -> vector<2x1x16xf32>
    %c1_4 = arith.constant 1 : index
    %31 = memref.load %arg1[%c1_4] : memref<144xf32, #tpu.memory_space<smem>>
    %32 = vector.broadcast %31 : f32 to vector<2x1x16xf32>
    %33 = arith.mulf %32, %30 : vector<2x1x16xf32>
    %34 = arith.addf %15, %33 : vector<2x1x16xf32>
    %c37 = arith.constant 37 : index
    %35 = memref.load %arg1[%c37] : memref<144xf32, #tpu.memory_space<smem>>
    %36 = vector.broadcast %35 : f32 to vector<2x1x16xf32>
    %37 = arith.mulf %36, %30 : vector<2x1x16xf32>
    %38 = arith.addf %19, %37 : vector<2x1x16xf32>
    %c73 = arith.constant 73 : index
    %39 = memref.load %arg1[%c73] : memref<144xf32, #tpu.memory_space<smem>>
    %40 = vector.broadcast %39 : f32 to vector<2x1x16xf32>
    %41 = arith.mulf %40, %30 : vector<2x1x16xf32>
    %42 = arith.addf %23, %41 : vector<2x1x16xf32>
    %c109 = arith.constant 109 : index
    %43 = memref.load %arg1[%c109] : memref<144xf32, #tpu.memory_space<smem>>
    %44 = vector.broadcast %43 : f32 to vector<2x1x16xf32>
    %45 = arith.mulf %44, %30 : vector<2x1x16xf32>
    %46 = arith.addf %27, %45 : vector<2x1x16xf32>
    %47 = vector.extract_strided_slice %8 {offsets = [0, 0, 14], sizes = [2, 1, 2], strides = [1, 1, 1]} : vector<2x1x16xf32> to vector<2x1x2xf32>
    %48 = vector.extract_strided_slice %8 {offsets = [0, 0, 0], sizes = [2, 1, 14], strides = [1, 1, 1]} : vector<2x1x16xf32> to vector<2x1x14xf32>
    %49 = tpu.concatenate %47, %48 in 2 : vector<2x1x2xf32>, vector<2x1x14xf32> -> vector<2x1x16xf32>
    %c2_5 = arith.constant 2 : index
    %50 = memref.load %arg1[%c2_5] : memref<144xf32, #tpu.memory_space<smem>>
    %51 = vector.broadcast %50 : f32 to vector<2x1x16xf32>
    %52 = arith.mulf %51, %49 : vector<2x1x16xf32>
    %53 = arith.addf %34, %52 : vector<2x1x16xf32>
    %c38 = arith.constant 38 : index
    %54 = memref.load %arg1[%c38] : memref<144xf32, #tpu.memory_space<smem>>
    %55 = vector.broadcast %54 : f32 to vector<2x1x16xf32>
    %56 = arith.mulf %55, %49 : vector<2x1x16xf32>
    %57 = arith.addf %38, %56 : vector<2x1x16xf32>
    %c74 = arith.constant 74 : index
    %58 = memref.load %arg1[%c74] : memref<144xf32, #tpu.memory_space<smem>>
    %59 = vector.broadcast %58 : f32 to vector<2x1x16xf32>
    %60 = arith.mulf %59, %49 : vector<2x1x16xf32>
    %61 = arith.addf %42, %60 : vector<2x1x16xf32>
    %c110 = arith.constant 110 : index
    %62 = memref.load %arg1[%c110] : memref<144xf32, #tpu.memory_space<smem>>
    %63 = vector.broadcast %62 : f32 to vector<2x1x16xf32>
    %64 = arith.mulf %63, %49 : vector<2x1x16xf32>
    %65 = arith.addf %46, %64 : vector<2x1x16xf32>
    %66 = vector.extract_strided_slice %8 {offsets = [0, 0, 15], sizes = [2, 1, 1], strides = [1, 1, 1]} : vector<2x1x16xf32> to vector<2x1x1xf32>
    %67 = vector.extract_strided_slice %8 {offsets = [0, 0, 0], sizes = [2, 1, 15], strides = [1, 1, 1]} : vector<2x1x16xf32> to vector<2x1x15xf32>
    %68 = tpu.concatenate %66, %67 in 2 : vector<2x1x1xf32>, vector<2x1x15xf32> -> vector<2x1x16xf32>
    %c3_6 = arith.constant 3 : index
    %69 = memref.load %arg1[%c3_6] : memref<144xf32, #tpu.memory_space<smem>>
    %70 = vector.broadcast %69 : f32 to vector<2x1x16xf32>
    %71 = arith.mulf %70, %68 : vector<2x1x16xf32>
    %72 = arith.addf %53, %71 : vector<2x1x16xf32>
    %c39 = arith.constant 39 : index
    %73 = memref.load %arg1[%c39] : memref<144xf32, #tpu.memory_space<smem>>
    %74 = vector.broadcast %73 : f32 to vector<2x1x16xf32>
    %75 = arith.mulf %74, %68 : vector<2x1x16xf32>
    %76 = arith.addf %57, %75 : vector<2x1x16xf32>
    %c75 = arith.constant 75 : index
    %77 = memref.load %arg1[%c75] : memref<144xf32, #tpu.memory_space<smem>>
    %78 = vector.broadcast %77 : f32 to vector<2x1x16xf32>
    %79 = arith.mulf %78, %68 : vector<2x1x16xf32>
    %80 = arith.addf %61, %79 : vector<2x1x16xf32>
    %c111 = arith.constant 111 : index
    %81 = memref.load %arg1[%c111] : memref<144xf32, #tpu.memory_space<smem>>
    %82 = vector.broadcast %81 : f32 to vector<2x1x16xf32>
    %83 = arith.mulf %82, %68 : vector<2x1x16xf32>
    %84 = arith.addf %65, %83 : vector<2x1x16xf32>
    %c4 = arith.constant 4 : index
    %85 = memref.load %arg1[%c4] : memref<144xf32, #tpu.memory_space<smem>>
    %86 = vector.broadcast %85 : f32 to vector<2x1x16xf32>
    %87 = arith.mulf %86, %8 : vector<2x1x16xf32>
    %88 = arith.addf %72, %87 : vector<2x1x16xf32>
    %c40 = arith.constant 40 : index
    %89 = memref.load %arg1[%c40] : memref<144xf32, #tpu.memory_space<smem>>
    %90 = vector.broadcast %89 : f32 to vector<2x1x16xf32>
    %91 = arith.mulf %90, %8 : vector<2x1x16xf32>
    %92 = arith.addf %76, %91 : vector<2x1x16xf32>
    %c76 = arith.constant 76 : index
    %93 = memref.load %arg1[%c76] : memref<144xf32, #tpu.memory_space<smem>>
    %94 = vector.broadcast %93 : f32 to vector<2x1x16xf32>
    %95 = arith.mulf %94, %8 : vector<2x1x16xf32>
    %96 = arith.addf %80, %95 : vector<2x1x16xf32>
    %c112 = arith.constant 112 : index
    %97 = memref.load %arg1[%c112] : memref<144xf32, #tpu.memory_space<smem>>
    %98 = vector.broadcast %97 : f32 to vector<2x1x16xf32>
    %99 = arith.mulf %98, %8 : vector<2x1x16xf32>
    %100 = arith.addf %84, %99 : vector<2x1x16xf32>
    %101 = vector.extract_strided_slice %8 {offsets = [0, 0, 1], sizes = [2, 1, 15], strides = [1, 1, 1]} : vector<2x1x16xf32> to vector<2x1x15xf32>
    %102 = vector.extract_strided_slice %8 {offsets = [0, 0, 0], sizes = [2, 1, 1], strides = [1, 1, 1]} : vector<2x1x16xf32> to vector<2x1x1xf32>
    %103 = tpu.concatenate %101, %102 in 2 : vector<2x1x15xf32>, vector<2x1x1xf32> -> vector<2x1x16xf32>
    %c5 = arith.constant 5 : index
    %104 = memref.load %arg1[%c5] : memref<144xf32, #tpu.memory_space<smem>>
    %105 = vector.broadcast %104 : f32 to vector<2x1x16xf32>
    %106 = arith.mulf %105, %103 : vector<2x1x16xf32>
    %107 = arith.addf %88, %106 : vector<2x1x16xf32>
    %c41 = arith.constant 41 : index
    %108 = memref.load %arg1[%c41] : memref<144xf32, #tpu.memory_space<smem>>
    %109 = vector.broadcast %108 : f32 to vector<2x1x16xf32>
    %110 = arith.mulf %109, %103 : vector<2x1x16xf32>
    %111 = arith.addf %92, %110 : vector<2x1x16xf32>
    %c77 = arith.constant 77 : index
    %112 = memref.load %arg1[%c77] : memref<144xf32, #tpu.memory_space<smem>>
    %113 = vector.broadcast %112 : f32 to vector<2x1x16xf32>
    %114 = arith.mulf %113, %103 : vector<2x1x16xf32>
    %115 = arith.addf %96, %114 : vector<2x1x16xf32>
    %c113 = arith.constant 113 : index
    %116 = memref.load %arg1[%c113] : memref<144xf32, #tpu.memory_space<smem>>
    %117 = vector.broadcast %116 : f32 to vector<2x1x16xf32>
    %118 = arith.mulf %117, %103 : vector<2x1x16xf32>
    %119 = arith.addf %100, %118 : vector<2x1x16xf32>
    %120 = vector.extract_strided_slice %8 {offsets = [0, 0, 2], sizes = [2, 1, 14], strides = [1, 1, 1]} : vector<2x1x16xf32> to vector<2x1x14xf32>
    %121 = vector.extract_strided_slice %8 {offsets = [0, 0, 0], sizes = [2, 1, 2], strides = [1, 1, 1]} : vector<2x1x16xf32> to vector<2x1x2xf32>
    %122 = tpu.concatenate %120, %121 in 2 : vector<2x1x14xf32>, vector<2x1x2xf32> -> vector<2x1x16xf32>
    %c6 = arith.constant 6 : index
    %123 = memref.load %arg1[%c6] : memref<144xf32, #tpu.memory_space<smem>>
    %124 = vector.broadcast %123 : f32 to vector<2x1x16xf32>
    %125 = arith.mulf %124, %122 : vector<2x1x16xf32>
    %126 = arith.addf %107, %125 : vector<2x1x16xf32>
    %c42 = arith.constant 42 : index
    %127 = memref.load %arg1[%c42] : memref<144xf32, #tpu.memory_space<smem>>
    %128 = vector.broadcast %127 : f32 to vector<2x1x16xf32>
    %129 = arith.mulf %128, %122 : vector<2x1x16xf32>
    %130 = arith.addf %111, %129 : vector<2x1x16xf32>
    %c78 = arith.constant 78 : index
    %131 = memref.load %arg1[%c78] : memref<144xf32, #tpu.memory_space<smem>>
    %132 = vector.broadcast %131 : f32 to vector<2x1x16xf32>
    %133 = arith.mulf %132, %122 : vector<2x1x16xf32>
    %134 = arith.addf %115, %133 : vector<2x1x16xf32>
    %c114 = arith.constant 114 : index
    %135 = memref.load %arg1[%c114] : memref<144xf32, #tpu.memory_space<smem>>
    %136 = vector.broadcast %135 : f32 to vector<2x1x16xf32>
    %137 = arith.mulf %136, %122 : vector<2x1x16xf32>
    %138 = arith.addf %119, %137 : vector<2x1x16xf32>
    %139 = vector.extract_strided_slice %8 {offsets = [0, 0, 3], sizes = [2, 1, 13], strides = [1, 1, 1]} : vector<2x1x16xf32> to vector<2x1x13xf32>
    %140 = vector.extract_strided_slice %8 {offsets = [0, 0, 0], sizes = [2, 1, 3], strides = [1, 1, 1]} : vector<2x1x16xf32> to vector<2x1x3xf32>
    %141 = tpu.concatenate %139, %140 in 2 : vector<2x1x13xf32>, vector<2x1x3xf32> -> vector<2x1x16xf32>
    %c7 = arith.constant 7 : index
    %142 = memref.load %arg1[%c7] : memref<144xf32, #tpu.memory_space<smem>>
    %143 = vector.broadcast %142 : f32 to vector<2x1x16xf32>
    %144 = arith.mulf %143, %141 : vector<2x1x16xf32>
    %145 = arith.addf %126, %144 : vector<2x1x16xf32>
    %c43 = arith.constant 43 : index
    %146 = memref.load %arg1[%c43] : memref<144xf32, #tpu.memory_space<smem>>
    %147 = vector.broadcast %146 : f32 to vector<2x1x16xf32>
    %148 = arith.mulf %147, %141 : vector<2x1x16xf32>
    %149 = arith.addf %130, %148 : vector<2x1x16xf32>
    %c79 = arith.constant 79 : index
    %150 = memref.load %arg1[%c79] : memref<144xf32, #tpu.memory_space<smem>>
    %151 = vector.broadcast %150 : f32 to vector<2x1x16xf32>
    %152 = arith.mulf %151, %141 : vector<2x1x16xf32>
    %153 = arith.addf %134, %152 : vector<2x1x16xf32>
    %c115 = arith.constant 115 : index
    %154 = memref.load %arg1[%c115] : memref<144xf32, #tpu.memory_space<smem>>
    %155 = vector.broadcast %154 : f32 to vector<2x1x16xf32>
    %156 = arith.mulf %155, %141 : vector<2x1x16xf32>
    %157 = arith.addf %138, %156 : vector<2x1x16xf32>
    %158 = vector.extract_strided_slice %8 {offsets = [0, 0, 4], sizes = [2, 1, 12], strides = [1, 1, 1]} : vector<2x1x16xf32> to vector<2x1x12xf32>
    %159 = vector.extract_strided_slice %8 {offsets = [0, 0, 0], sizes = [2, 1, 4], strides = [1, 1, 1]} : vector<2x1x16xf32> to vector<2x1x4xf32>
    %160 = tpu.concatenate %158, %159 in 2 : vector<2x1x12xf32>, vector<2x1x4xf32> -> vector<2x1x16xf32>
    %c8 = arith.constant 8 : index
    %161 = memref.load %arg1[%c8] : memref<144xf32, #tpu.memory_space<smem>>
    %162 = vector.broadcast %161 : f32 to vector<2x1x16xf32>
    %163 = arith.mulf %162, %160 : vector<2x1x16xf32>
    %164 = arith.addf %145, %163 : vector<2x1x16xf32>
    %c44 = arith.constant 44 : index
    %165 = memref.load %arg1[%c44] : memref<144xf32, #tpu.memory_space<smem>>
    %166 = vector.broadcast %165 : f32 to vector<2x1x16xf32>
    %167 = arith.mulf %166, %160 : vector<2x1x16xf32>
    %168 = arith.addf %149, %167 : vector<2x1x16xf32>
    %c80 = arith.constant 80 : index
    %169 = memref.load %arg1[%c80] : memref<144xf32, #tpu.memory_space<smem>>
    %170 = vector.broadcast %169 : f32 to vector<2x1x16xf32>
    %171 = arith.mulf %170, %160 : vector<2x1x16xf32>
    %172 = arith.addf %153, %171 : vector<2x1x16xf32>
    %c116 = arith.constant 116 : index
    %173 = memref.load %arg1[%c116] : memref<144xf32, #tpu.memory_space<smem>>
    %174 = vector.broadcast %173 : f32 to vector<2x1x16xf32>
    %175 = arith.mulf %174, %160 : vector<2x1x16xf32>
    %176 = arith.addf %157, %175 : vector<2x1x16xf32>
    %c0_7 = arith.constant 0 : index
    %c1_8 = arith.constant 1 : index
    %c0_9 = arith.constant 0 : index
    %177 = vector.load %arg0[%c0_7, %c1_8, %c0_9] : memref<2x4x16xf32, #tpu.memory_space<vmem>>, vector<2x1x16xf32>
    %178 = vector.extract_strided_slice %177 {offsets = [0, 0, 12], sizes = [2, 1, 4], strides = [1, 1, 1]} : vector<2x1x16xf32> to vector<2x1x4xf32>
    %179 = vector.extract_strided_slice %177 {offsets = [0, 0, 0], sizes = [2, 1, 12], strides = [1, 1, 1]} : vector<2x1x16xf32> to vector<2x1x12xf32>
    %180 = tpu.concatenate %178, %179 in 2 : vector<2x1x4xf32>, vector<2x1x12xf32> -> vector<2x1x16xf32>
    %c9 = arith.constant 9 : index
    %181 = memref.load %arg1[%c9] : memref<144xf32, #tpu.memory_space<smem>>
    %182 = vector.broadcast %181 : f32 to vector<2x1x16xf32>
    %183 = arith.mulf %182, %180 : vector<2x1x16xf32>
    %184 = arith.addf %164, %183 : vector<2x1x16xf32>
    %c45 = arith.constant 45 : index
    %185 = memref.load %arg1[%c45] : memref<144xf32, #tpu.memory_space<smem>>
    %186 = vector.broadcast %185 : f32 to vector<2x1x16xf32>
    %187 = arith.mulf %186, %180 : vector<2x1x16xf32>
    %188 = arith.addf %168, %187 : vector<2x1x16xf32>
    %c81 = arith.constant 81 : index
    %189 = memref.load %arg1[%c81] : memref<144xf32, #tpu.memory_space<smem>>
    %190 = vector.broadcast %189 : f32 to vector<2x1x16xf32>
    %191 = arith.mulf %190, %180 : vector<2x1x16xf32>
    %192 = arith.addf %172, %191 : vector<2x1x16xf32>
    %c117 = arith.constant 117 : index
    %193 = memref.load %arg1[%c117] : memref<144xf32, #tpu.memory_space<smem>>
    %194 = vector.broadcast %193 : f32 to vector<2x1x16xf32>
    %195 = arith.mulf %194, %180 : vector<2x1x16xf32>
    %196 = arith.addf %176, %195 : vector<2x1x16xf32>
    %197 = vector.extract_strided_slice %177 {offsets = [0, 0, 13], sizes = [2, 1, 3], strides = [1, 1, 1]} : vector<2x1x16xf32> to vector<2x1x3xf32>
    %198 = vector.extract_strided_slice %177 {offsets = [0, 0, 0], sizes = [2, 1, 13], strides = [1, 1, 1]} : vector<2x1x16xf32> to vector<2x1x13xf32>
    %199 = tpu.concatenate %197, %198 in 2 : vector<2x1x3xf32>, vector<2x1x13xf32> -> vector<2x1x16xf32>
    %c10 = arith.constant 10 : index
    %200 = memref.load %arg1[%c10] : memref<144xf32, #tpu.memory_space<smem>>
    %201 = vector.broadcast %200 : f32 to vector<2x1x16xf32>
    %202 = arith.mulf %201, %199 : vector<2x1x16xf32>
    %203 = arith.addf %184, %202 : vector<2x1x16xf32>
    %c46 = arith.constant 46 : index
    %204 = memref.load %arg1[%c46] : memref<144xf32, #tpu.memory_space<smem>>
    %205 = vector.broadcast %204 : f32 to vector<2x1x16xf32>
    %206 = arith.mulf %205, %199 : vector<2x1x16xf32>
    %207 = arith.addf %188, %206 : vector<2x1x16xf32>
    %c82 = arith.constant 82 : index
    %208 = memref.load %arg1[%c82] : memref<144xf32, #tpu.memory_space<smem>>
    %209 = vector.broadcast %208 : f32 to vector<2x1x16xf32>
    %210 = arith.mulf %209, %199 : vector<2x1x16xf32>
    %211 = arith.addf %192, %210 : vector<2x1x16xf32>
    %c118 = arith.constant 118 : index
    %212 = memref.load %arg1[%c118] : memref<144xf32, #tpu.memory_space<smem>>
    %213 = vector.broadcast %212 : f32 to vector<2x1x16xf32>
    %214 = arith.mulf %213, %199 : vector<2x1x16xf32>
    %215 = arith.addf %196, %214 : vector<2x1x16xf32>
    %216 = vector.extract_strided_slice %177 {offsets = [0, 0, 14], sizes = [2, 1, 2], strides = [1, 1, 1]} : vector<2x1x16xf32> to vector<2x1x2xf32>
    %217 = vector.extract_strided_slice %177 {offsets = [0, 0, 0], sizes = [2, 1, 14], strides = [1, 1, 1]} : vector<2x1x16xf32> to vector<2x1x14xf32>
    %218 = tpu.concatenate %216, %217 in 2 : vector<2x1x2xf32>, vector<2x1x14xf32> -> vector<2x1x16xf32>
    %c11 = arith.constant 11 : index
    %219 = memref.load %arg1[%c11] : memref<144xf32, #tpu.memory_space<smem>>
    %220 = vector.broadcast %219 : f32 to vector<2x1x16xf32>
    %221 = arith.mulf %220, %218 : vector<2x1x16xf32>
    %222 = arith.addf %203, %221 : vector<2x1x16xf32>
    %c47 = arith.constant 47 : index
    %223 = memref.load %arg1[%c47] : memref<144xf32, #tpu.memory_space<smem>>
    %224 = vector.broadcast %223 : f32 to vector<2x1x16xf32>
    %225 = arith.mulf %224, %218 : vector<2x1x16xf32>
    %226 = arith.addf %207, %225 : vector<2x1x16xf32>
    %c83 = arith.constant 83 : index
    %227 = memref.load %arg1[%c83] : memref<144xf32, #tpu.memory_space<smem>>
    %228 = vector.broadcast %227 : f32 to vector<2x1x16xf32>
    %229 = arith.mulf %228, %218 : vector<2x1x16xf32>
    %230 = arith.addf %211, %229 : vector<2x1x16xf32>
    %c119 = arith.constant 119 : index
    %231 = memref.load %arg1[%c119] : memref<144xf32, #tpu.memory_space<smem>>
    %232 = vector.broadcast %231 : f32 to vector<2x1x16xf32>
    %233 = arith.mulf %232, %218 : vector<2x1x16xf32>
    %234 = arith.addf %215, %233 : vector<2x1x16xf32>
    %235 = vector.extract_strided_slice %177 {offsets = [0, 0, 15], sizes = [2, 1, 1], strides = [1, 1, 1]} : vector<2x1x16xf32> to vector<2x1x1xf32>
    %236 = vector.extract_strided_slice %177 {offsets = [0, 0, 0], sizes = [2, 1, 15], strides = [1, 1, 1]} : vector<2x1x16xf32> to vector<2x1x15xf32>
    %237 = tpu.concatenate %235, %236 in 2 : vector<2x1x1xf32>, vector<2x1x15xf32> -> vector<2x1x16xf32>
    %c12 = arith.constant 12 : index
    %238 = memref.load %arg1[%c12] : memref<144xf32, #tpu.memory_space<smem>>
    %239 = vector.broadcast %238 : f32 to vector<2x1x16xf32>
    %240 = arith.mulf %239, %237 : vector<2x1x16xf32>
    %241 = arith.addf %222, %240 : vector<2x1x16xf32>
    %c48 = arith.constant 48 : index
    %242 = memref.load %arg1[%c48] : memref<144xf32, #tpu.memory_space<smem>>
    %243 = vector.broadcast %242 : f32 to vector<2x1x16xf32>
    %244 = arith.mulf %243, %237 : vector<2x1x16xf32>
    %245 = arith.addf %226, %244 : vector<2x1x16xf32>
    %c84 = arith.constant 84 : index
    %246 = memref.load %arg1[%c84] : memref<144xf32, #tpu.memory_space<smem>>
    %247 = vector.broadcast %246 : f32 to vector<2x1x16xf32>
    %248 = arith.mulf %247, %237 : vector<2x1x16xf32>
    %249 = arith.addf %230, %248 : vector<2x1x16xf32>
    %c120 = arith.constant 120 : index
    %250 = memref.load %arg1[%c120] : memref<144xf32, #tpu.memory_space<smem>>
    %251 = vector.broadcast %250 : f32 to vector<2x1x16xf32>
    %252 = arith.mulf %251, %237 : vector<2x1x16xf32>
    %253 = arith.addf %234, %252 : vector<2x1x16xf32>
    %c13 = arith.constant 13 : index
    %254 = memref.load %arg1[%c13] : memref<144xf32, #tpu.memory_space<smem>>
    %255 = vector.broadcast %254 : f32 to vector<2x1x16xf32>
    %256 = arith.mulf %255, %177 : vector<2x1x16xf32>
    %257 = arith.addf %241, %256 : vector<2x1x16xf32>
    %c49 = arith.constant 49 : index
    %258 = memref.load %arg1[%c49] : memref<144xf32, #tpu.memory_space<smem>>
    %259 = vector.broadcast %258 : f32 to vector<2x1x16xf32>
    %260 = arith.mulf %259, %177 : vector<2x1x16xf32>
    %261 = arith.addf %245, %260 : vector<2x1x16xf32>
    %c85 = arith.constant 85 : index
    %262 = memref.load %arg1[%c85] : memref<144xf32, #tpu.memory_space<smem>>
    %263 = vector.broadcast %262 : f32 to vector<2x1x16xf32>
    %264 = arith.mulf %263, %177 : vector<2x1x16xf32>
    %265 = arith.addf %249, %264 : vector<2x1x16xf32>
    %c121 = arith.constant 121 : index
    %266 = memref.load %arg1[%c121] : memref<144xf32, #tpu.memory_space<smem>>
    %267 = vector.broadcast %266 : f32 to vector<2x1x16xf32>
    %268 = arith.mulf %267, %177 : vector<2x1x16xf32>
    %269 = arith.addf %253, %268 : vector<2x1x16xf32>
    %270 = vector.extract_strided_slice %177 {offsets = [0, 0, 1], sizes = [2, 1, 15], strides = [1, 1, 1]} : vector<2x1x16xf32> to vector<2x1x15xf32>
    %271 = vector.extract_strided_slice %177 {offsets = [0, 0, 0], sizes = [2, 1, 1], strides = [1, 1, 1]} : vector<2x1x16xf32> to vector<2x1x1xf32>
    %272 = tpu.concatenate %270, %271 in 2 : vector<2x1x15xf32>, vector<2x1x1xf32> -> vector<2x1x16xf32>
    %c14 = arith.constant 14 : index
    %273 = memref.load %arg1[%c14] : memref<144xf32, #tpu.memory_space<smem>>
    %274 = vector.broadcast %273 : f32 to vector<2x1x16xf32>
    %275 = arith.mulf %274, %272 : vector<2x1x16xf32>
    %276 = arith.addf %257, %275 : vector<2x1x16xf32>
    %c50 = arith.constant 50 : index
    %277 = memref.load %arg1[%c50] : memref<144xf32, #tpu.memory_space<smem>>
    %278 = vector.broadcast %277 : f32 to vector<2x1x16xf32>
    %279 = arith.mulf %278, %272 : vector<2x1x16xf32>
    %280 = arith.addf %261, %279 : vector<2x1x16xf32>
    %c86 = arith.constant 86 : index
    %281 = memref.load %arg1[%c86] : memref<144xf32, #tpu.memory_space<smem>>
    %282 = vector.broadcast %281 : f32 to vector<2x1x16xf32>
    %283 = arith.mulf %282, %272 : vector<2x1x16xf32>
    %284 = arith.addf %265, %283 : vector<2x1x16xf32>
    %c122 = arith.constant 122 : index
    %285 = memref.load %arg1[%c122] : memref<144xf32, #tpu.memory_space<smem>>
    %286 = vector.broadcast %285 : f32 to vector<2x1x16xf32>
    %287 = arith.mulf %286, %272 : vector<2x1x16xf32>
    %288 = arith.addf %269, %287 : vector<2x1x16xf32>
    %289 = vector.extract_strided_slice %177 {offsets = [0, 0, 2], sizes = [2, 1, 14], strides = [1, 1, 1]} : vector<2x1x16xf32> to vector<2x1x14xf32>
    %290 = vector.extract_strided_slice %177 {offsets = [0, 0, 0], sizes = [2, 1, 2], strides = [1, 1, 1]} : vector<2x1x16xf32> to vector<2x1x2xf32>
    %291 = tpu.concatenate %289, %290 in 2 : vector<2x1x14xf32>, vector<2x1x2xf32> -> vector<2x1x16xf32>
    %c15 = arith.constant 15 : index
    %292 = memref.load %arg1[%c15] : memref<144xf32, #tpu.memory_space<smem>>
    %293 = vector.broadcast %292 : f32 to vector<2x1x16xf32>
    %294 = arith.mulf %293, %291 : vector<2x1x16xf32>
    %295 = arith.addf %276, %294 : vector<2x1x16xf32>
    %c51 = arith.constant 51 : index
    %296 = memref.load %arg1[%c51] : memref<144xf32, #tpu.memory_space<smem>>
    %297 = vector.broadcast %296 : f32 to vector<2x1x16xf32>
    %298 = arith.mulf %297, %291 : vector<2x1x16xf32>
    %299 = arith.addf %280, %298 : vector<2x1x16xf32>
    %c87 = arith.constant 87 : index
    %300 = memref.load %arg1[%c87] : memref<144xf32, #tpu.memory_space<smem>>
    %301 = vector.broadcast %300 : f32 to vector<2x1x16xf32>
    %302 = arith.mulf %301, %291 : vector<2x1x16xf32>
    %303 = arith.addf %284, %302 : vector<2x1x16xf32>
    %c123 = arith.constant 123 : index
    %304 = memref.load %arg1[%c123] : memref<144xf32, #tpu.memory_space<smem>>
    %305 = vector.broadcast %304 : f32 to vector<2x1x16xf32>
    %306 = arith.mulf %305, %291 : vector<2x1x16xf32>
    %307 = arith.addf %288, %306 : vector<2x1x16xf32>
    %308 = vector.extract_strided_slice %177 {offsets = [0, 0, 3], sizes = [2, 1, 13], strides = [1, 1, 1]} : vector<2x1x16xf32> to vector<2x1x13xf32>
    %309 = vector.extract_strided_slice %177 {offsets = [0, 0, 0], sizes = [2, 1, 3], strides = [1, 1, 1]} : vector<2x1x16xf32> to vector<2x1x3xf32>
    %310 = tpu.concatenate %308, %309 in 2 : vector<2x1x13xf32>, vector<2x1x3xf32> -> vector<2x1x16xf32>
    %c16 = arith.constant 16 : index
    %311 = memref.load %arg1[%c16] : memref<144xf32, #tpu.memory_space<smem>>
    %312 = vector.broadcast %311 : f32 to vector<2x1x16xf32>
    %313 = arith.mulf %312, %310 : vector<2x1x16xf32>
    %314 = arith.addf %295, %313 : vector<2x1x16xf32>
    %c52 = arith.constant 52 : index
    %315 = memref.load %arg1[%c52] : memref<144xf32, #tpu.memory_space<smem>>
    %316 = vector.broadcast %315 : f32 to vector<2x1x16xf32>
    %317 = arith.mulf %316, %310 : vector<2x1x16xf32>
    %318 = arith.addf %299, %317 : vector<2x1x16xf32>
    %c88 = arith.constant 88 : index
    %319 = memref.load %arg1[%c88] : memref<144xf32, #tpu.memory_space<smem>>
    %320 = vector.broadcast %319 : f32 to vector<2x1x16xf32>
    %321 = arith.mulf %320, %310 : vector<2x1x16xf32>
    %322 = arith.addf %303, %321 : vector<2x1x16xf32>
    %c124 = arith.constant 124 : index
    %323 = memref.load %arg1[%c124] : memref<144xf32, #tpu.memory_space<smem>>
    %324 = vector.broadcast %323 : f32 to vector<2x1x16xf32>
    %325 = arith.mulf %324, %310 : vector<2x1x16xf32>
    %326 = arith.addf %307, %325 : vector<2x1x16xf32>
    %327 = vector.extract_strided_slice %177 {offsets = [0, 0, 4], sizes = [2, 1, 12], strides = [1, 1, 1]} : vector<2x1x16xf32> to vector<2x1x12xf32>
    %328 = vector.extract_strided_slice %177 {offsets = [0, 0, 0], sizes = [2, 1, 4], strides = [1, 1, 1]} : vector<2x1x16xf32> to vector<2x1x4xf32>
    %329 = tpu.concatenate %327, %328 in 2 : vector<2x1x12xf32>, vector<2x1x4xf32> -> vector<2x1x16xf32>
    %c17 = arith.constant 17 : index
    %330 = memref.load %arg1[%c17] : memref<144xf32, #tpu.memory_space<smem>>
    %331 = vector.broadcast %330 : f32 to vector<2x1x16xf32>
    %332 = arith.mulf %331, %329 : vector<2x1x16xf32>
    %333 = arith.addf %314, %332 : vector<2x1x16xf32>
    %c53 = arith.constant 53 : index
    %334 = memref.load %arg1[%c53] : memref<144xf32, #tpu.memory_space<smem>>
    %335 = vector.broadcast %334 : f32 to vector<2x1x16xf32>
    %336 = arith.mulf %335, %329 : vector<2x1x16xf32>
    %337 = arith.addf %318, %336 : vector<2x1x16xf32>
    %c89 = arith.constant 89 : index
    %338 = memref.load %arg1[%c89] : memref<144xf32, #tpu.memory_space<smem>>
    %339 = vector.broadcast %338 : f32 to vector<2x1x16xf32>
    %340 = arith.mulf %339, %329 : vector<2x1x16xf32>
    %341 = arith.addf %322, %340 : vector<2x1x16xf32>
    %c125 = arith.constant 125 : index
    %342 = memref.load %arg1[%c125] : memref<144xf32, #tpu.memory_space<smem>>
    %343 = vector.broadcast %342 : f32 to vector<2x1x16xf32>
    %344 = arith.mulf %343, %329 : vector<2x1x16xf32>
    %345 = arith.addf %326, %344 : vector<2x1x16xf32>
    %c0_10 = arith.constant 0 : index
    %c2_11 = arith.constant 2 : index
    %c0_12 = arith.constant 0 : index
    %346 = vector.load %arg0[%c0_10, %c2_11, %c0_12] : memref<2x4x16xf32, #tpu.memory_space<vmem>>, vector<2x1x16xf32>
    %347 = vector.extract_strided_slice %346 {offsets = [0, 0, 12], sizes = [2, 1, 4], strides = [1, 1, 1]} : vector<2x1x16xf32> to vector<2x1x4xf32>
    %348 = vector.extract_strided_slice %346 {offsets = [0, 0, 0], sizes = [2, 1, 12], strides = [1, 1, 1]} : vector<2x1x16xf32> to vector<2x1x12xf32>
    %349 = tpu.concatenate %347, %348 in 2 : vector<2x1x4xf32>, vector<2x1x12xf32> -> vector<2x1x16xf32>
    %c18 = arith.constant 18 : index
    %350 = memref.load %arg1[%c18] : memref<144xf32, #tpu.memory_space<smem>>
    %351 = vector.broadcast %350 : f32 to vector<2x1x16xf32>
    %352 = arith.mulf %351, %349 : vector<2x1x16xf32>
    %353 = arith.addf %333, %352 : vector<2x1x16xf32>
    %c54 = arith.constant 54 : index
    %354 = memref.load %arg1[%c54] : memref<144xf32, #tpu.memory_space<smem>>
    %355 = vector.broadcast %354 : f32 to vector<2x1x16xf32>
    %356 = arith.mulf %355, %349 : vector<2x1x16xf32>
    %357 = arith.addf %337, %356 : vector<2x1x16xf32>
    %c90 = arith.constant 90 : index
    %358 = memref.load %arg1[%c90] : memref<144xf32, #tpu.memory_space<smem>>
    %359 = vector.broadcast %358 : f32 to vector<2x1x16xf32>
    %360 = arith.mulf %359, %349 : vector<2x1x16xf32>
    %361 = arith.addf %341, %360 : vector<2x1x16xf32>
    %c126 = arith.constant 126 : index
    %362 = memref.load %arg1[%c126] : memref<144xf32, #tpu.memory_space<smem>>
    %363 = vector.broadcast %362 : f32 to vector<2x1x16xf32>
    %364 = arith.mulf %363, %349 : vector<2x1x16xf32>
    %365 = arith.addf %345, %364 : vector<2x1x16xf32>
    %366 = vector.extract_strided_slice %346 {offsets = [0, 0, 13], sizes = [2, 1, 3], strides = [1, 1, 1]} : vector<2x1x16xf32> to vector<2x1x3xf32>
    %367 = vector.extract_strided_slice %346 {offsets = [0, 0, 0], sizes = [2, 1, 13], strides = [1, 1, 1]} : vector<2x1x16xf32> to vector<2x1x13xf32>
    %368 = tpu.concatenate %366, %367 in 2 : vector<2x1x3xf32>, vector<2x1x13xf32> -> vector<2x1x16xf32>
    %c19 = arith.constant 19 : index
    %369 = memref.load %arg1[%c19] : memref<144xf32, #tpu.memory_space<smem>>
    %370 = vector.broadcast %369 : f32 to vector<2x1x16xf32>
    %371 = arith.mulf %370, %368 : vector<2x1x16xf32>
    %372 = arith.addf %353, %371 : vector<2x1x16xf32>
    %c55 = arith.constant 55 : index
    %373 = memref.load %arg1[%c55] : memref<144xf32, #tpu.memory_space<smem>>
    %374 = vector.broadcast %373 : f32 to vector<2x1x16xf32>
    %375 = arith.mulf %374, %368 : vector<2x1x16xf32>
    %376 = arith.addf %357, %375 : vector<2x1x16xf32>
    %c91 = arith.constant 91 : index
    %377 = memref.load %arg1[%c91] : memref<144xf32, #tpu.memory_space<smem>>
    %378 = vector.broadcast %377 : f32 to vector<2x1x16xf32>
    %379 = arith.mulf %378, %368 : vector<2x1x16xf32>
    %380 = arith.addf %361, %379 : vector<2x1x16xf32>
    %c127 = arith.constant 127 : index
    %381 = memref.load %arg1[%c127] : memref<144xf32, #tpu.memory_space<smem>>
    %382 = vector.broadcast %381 : f32 to vector<2x1x16xf32>
    %383 = arith.mulf %382, %368 : vector<2x1x16xf32>
    %384 = arith.addf %365, %383 : vector<2x1x16xf32>
    %385 = vector.extract_strided_slice %346 {offsets = [0, 0, 14], sizes = [2, 1, 2], strides = [1, 1, 1]} : vector<2x1x16xf32> to vector<2x1x2xf32>
    %386 = vector.extract_strided_slice %346 {offsets = [0, 0, 0], sizes = [2, 1, 14], strides = [1, 1, 1]} : vector<2x1x16xf32> to vector<2x1x14xf32>
    %387 = tpu.concatenate %385, %386 in 2 : vector<2x1x2xf32>, vector<2x1x14xf32> -> vector<2x1x16xf32>
    %c20 = arith.constant 20 : index
    %388 = memref.load %arg1[%c20] : memref<144xf32, #tpu.memory_space<smem>>
    %389 = vector.broadcast %388 : f32 to vector<2x1x16xf32>
    %390 = arith.mulf %389, %387 : vector<2x1x16xf32>
    %391 = arith.addf %372, %390 : vector<2x1x16xf32>
    %c56 = arith.constant 56 : index
    %392 = memref.load %arg1[%c56] : memref<144xf32, #tpu.memory_space<smem>>
    %393 = vector.broadcast %392 : f32 to vector<2x1x16xf32>
    %394 = arith.mulf %393, %387 : vector<2x1x16xf32>
    %395 = arith.addf %376, %394 : vector<2x1x16xf32>
    %c92 = arith.constant 92 : index
    %396 = memref.load %arg1[%c92] : memref<144xf32, #tpu.memory_space<smem>>
    %397 = vector.broadcast %396 : f32 to vector<2x1x16xf32>
    %398 = arith.mulf %397, %387 : vector<2x1x16xf32>
    %399 = arith.addf %380, %398 : vector<2x1x16xf32>
    %c128 = arith.constant 128 : index
    %400 = memref.load %arg1[%c128] : memref<144xf32, #tpu.memory_space<smem>>
    %401 = vector.broadcast %400 : f32 to vector<2x1x16xf32>
    %402 = arith.mulf %401, %387 : vector<2x1x16xf32>
    %403 = arith.addf %384, %402 : vector<2x1x16xf32>
    %404 = vector.extract_strided_slice %346 {offsets = [0, 0, 15], sizes = [2, 1, 1], strides = [1, 1, 1]} : vector<2x1x16xf32> to vector<2x1x1xf32>
    %405 = vector.extract_strided_slice %346 {offsets = [0, 0, 0], sizes = [2, 1, 15], strides = [1, 1, 1]} : vector<2x1x16xf32> to vector<2x1x15xf32>
    %406 = tpu.concatenate %404, %405 in 2 : vector<2x1x1xf32>, vector<2x1x15xf32> -> vector<2x1x16xf32>
    %c21 = arith.constant 21 : index
    %407 = memref.load %arg1[%c21] : memref<144xf32, #tpu.memory_space<smem>>
    %408 = vector.broadcast %407 : f32 to vector<2x1x16xf32>
    %409 = arith.mulf %408, %406 : vector<2x1x16xf32>
    %410 = arith.addf %391, %409 : vector<2x1x16xf32>
    %c57 = arith.constant 57 : index
    %411 = memref.load %arg1[%c57] : memref<144xf32, #tpu.memory_space<smem>>
    %412 = vector.broadcast %411 : f32 to vector<2x1x16xf32>
    %413 = arith.mulf %412, %406 : vector<2x1x16xf32>
    %414 = arith.addf %395, %413 : vector<2x1x16xf32>
    %c93 = arith.constant 93 : index
    %415 = memref.load %arg1[%c93] : memref<144xf32, #tpu.memory_space<smem>>
    %416 = vector.broadcast %415 : f32 to vector<2x1x16xf32>
    %417 = arith.mulf %416, %406 : vector<2x1x16xf32>
    %418 = arith.addf %399, %417 : vector<2x1x16xf32>
    %c129 = arith.constant 129 : index
    %419 = memref.load %arg1[%c129] : memref<144xf32, #tpu.memory_space<smem>>
    %420 = vector.broadcast %419 : f32 to vector<2x1x16xf32>
    %421 = arith.mulf %420, %406 : vector<2x1x16xf32>
    %422 = arith.addf %403, %421 : vector<2x1x16xf32>
    %c22 = arith.constant 22 : index
    %423 = memref.load %arg1[%c22] : memref<144xf32, #tpu.memory_space<smem>>
    %424 = vector.broadcast %423 : f32 to vector<2x1x16xf32>
    %425 = arith.mulf %424, %346 : vector<2x1x16xf32>
    %426 = arith.addf %410, %425 : vector<2x1x16xf32>
    %c58 = arith.constant 58 : index
    %427 = memref.load %arg1[%c58] : memref<144xf32, #tpu.memory_space<smem>>
    %428 = vector.broadcast %427 : f32 to vector<2x1x16xf32>
    %429 = arith.mulf %428, %346 : vector<2x1x16xf32>
    %430 = arith.addf %414, %429 : vector<2x1x16xf32>
    %c94 = arith.constant 94 : index
    %431 = memref.load %arg1[%c94] : memref<144xf32, #tpu.memory_space<smem>>
    %432 = vector.broadcast %431 : f32 to vector<2x1x16xf32>
    %433 = arith.mulf %432, %346 : vector<2x1x16xf32>
    %434 = arith.addf %418, %433 : vector<2x1x16xf32>
    %c130 = arith.constant 130 : index
    %435 = memref.load %arg1[%c130] : memref<144xf32, #tpu.memory_space<smem>>
    %436 = vector.broadcast %435 : f32 to vector<2x1x16xf32>
    %437 = arith.mulf %436, %346 : vector<2x1x16xf32>
    %438 = arith.addf %422, %437 : vector<2x1x16xf32>
    %439 = vector.extract_strided_slice %346 {offsets = [0, 0, 1], sizes = [2, 1, 15], strides = [1, 1, 1]} : vector<2x1x16xf32> to vector<2x1x15xf32>
    %440 = vector.extract_strided_slice %346 {offsets = [0, 0, 0], sizes = [2, 1, 1], strides = [1, 1, 1]} : vector<2x1x16xf32> to vector<2x1x1xf32>
    %441 = tpu.concatenate %439, %440 in 2 : vector<2x1x15xf32>, vector<2x1x1xf32> -> vector<2x1x16xf32>
    %c23 = arith.constant 23 : index
    %442 = memref.load %arg1[%c23] : memref<144xf32, #tpu.memory_space<smem>>
    %443 = vector.broadcast %442 : f32 to vector<2x1x16xf32>
    %444 = arith.mulf %443, %441 : vector<2x1x16xf32>
    %445 = arith.addf %426, %444 : vector<2x1x16xf32>
    %c59 = arith.constant 59 : index
    %446 = memref.load %arg1[%c59] : memref<144xf32, #tpu.memory_space<smem>>
    %447 = vector.broadcast %446 : f32 to vector<2x1x16xf32>
    %448 = arith.mulf %447, %441 : vector<2x1x16xf32>
    %449 = arith.addf %430, %448 : vector<2x1x16xf32>
    %c95 = arith.constant 95 : index
    %450 = memref.load %arg1[%c95] : memref<144xf32, #tpu.memory_space<smem>>
    %451 = vector.broadcast %450 : f32 to vector<2x1x16xf32>
    %452 = arith.mulf %451, %441 : vector<2x1x16xf32>
    %453 = arith.addf %434, %452 : vector<2x1x16xf32>
    %c131 = arith.constant 131 : index
    %454 = memref.load %arg1[%c131] : memref<144xf32, #tpu.memory_space<smem>>
    %455 = vector.broadcast %454 : f32 to vector<2x1x16xf32>
    %456 = arith.mulf %455, %441 : vector<2x1x16xf32>
    %457 = arith.addf %438, %456 : vector<2x1x16xf32>
    %458 = vector.extract_strided_slice %346 {offsets = [0, 0, 2], sizes = [2, 1, 14], strides = [1, 1, 1]} : vector<2x1x16xf32> to vector<2x1x14xf32>
    %459 = vector.extract_strided_slice %346 {offsets = [0, 0, 0], sizes = [2, 1, 2], strides = [1, 1, 1]} : vector<2x1x16xf32> to vector<2x1x2xf32>
    %460 = tpu.concatenate %458, %459 in 2 : vector<2x1x14xf32>, vector<2x1x2xf32> -> vector<2x1x16xf32>
    %c24 = arith.constant 24 : index
    %461 = memref.load %arg1[%c24] : memref<144xf32, #tpu.memory_space<smem>>
    %462 = vector.broadcast %461 : f32 to vector<2x1x16xf32>
    %463 = arith.mulf %462, %460 : vector<2x1x16xf32>
    %464 = arith.addf %445, %463 : vector<2x1x16xf32>
    %c60 = arith.constant 60 : index
    %465 = memref.load %arg1[%c60] : memref<144xf32, #tpu.memory_space<smem>>
    %466 = vector.broadcast %465 : f32 to vector<2x1x16xf32>
    %467 = arith.mulf %466, %460 : vector<2x1x16xf32>
    %468 = arith.addf %449, %467 : vector<2x1x16xf32>
    %c96 = arith.constant 96 : index
    %469 = memref.load %arg1[%c96] : memref<144xf32, #tpu.memory_space<smem>>
    %470 = vector.broadcast %469 : f32 to vector<2x1x16xf32>
    %471 = arith.mulf %470, %460 : vector<2x1x16xf32>
    %472 = arith.addf %453, %471 : vector<2x1x16xf32>
    %c132 = arith.constant 132 : index
    %473 = memref.load %arg1[%c132] : memref<144xf32, #tpu.memory_space<smem>>
    %474 = vector.broadcast %473 : f32 to vector<2x1x16xf32>
    %475 = arith.mulf %474, %460 : vector<2x1x16xf32>
    %476 = arith.addf %457, %475 : vector<2x1x16xf32>
    %477 = vector.extract_strided_slice %346 {offsets = [0, 0, 3], sizes = [2, 1, 13], strides = [1, 1, 1]} : vector<2x1x16xf32> to vector<2x1x13xf32>
    %478 = vector.extract_strided_slice %346 {offsets = [0, 0, 0], sizes = [2, 1, 3], strides = [1, 1, 1]} : vector<2x1x16xf32> to vector<2x1x3xf32>
    %479 = tpu.concatenate %477, %478 in 2 : vector<2x1x13xf32>, vector<2x1x3xf32> -> vector<2x1x16xf32>
    %c25 = arith.constant 25 : index
    %480 = memref.load %arg1[%c25] : memref<144xf32, #tpu.memory_space<smem>>
    %481 = vector.broadcast %480 : f32 to vector<2x1x16xf32>
    %482 = arith.mulf %481, %479 : vector<2x1x16xf32>
    %483 = arith.addf %464, %482 : vector<2x1x16xf32>
    %c61 = arith.constant 61 : index
    %484 = memref.load %arg1[%c61] : memref<144xf32, #tpu.memory_space<smem>>
    %485 = vector.broadcast %484 : f32 to vector<2x1x16xf32>
    %486 = arith.mulf %485, %479 : vector<2x1x16xf32>
    %487 = arith.addf %468, %486 : vector<2x1x16xf32>
    %c97 = arith.constant 97 : index
    %488 = memref.load %arg1[%c97] : memref<144xf32, #tpu.memory_space<smem>>
    %489 = vector.broadcast %488 : f32 to vector<2x1x16xf32>
    %490 = arith.mulf %489, %479 : vector<2x1x16xf32>
    %491 = arith.addf %472, %490 : vector<2x1x16xf32>
    %c133 = arith.constant 133 : index
    %492 = memref.load %arg1[%c133] : memref<144xf32, #tpu.memory_space<smem>>
    %493 = vector.broadcast %492 : f32 to vector<2x1x16xf32>
    %494 = arith.mulf %493, %479 : vector<2x1x16xf32>
    %495 = arith.addf %476, %494 : vector<2x1x16xf32>
    %496 = vector.extract_strided_slice %346 {offsets = [0, 0, 4], sizes = [2, 1, 12], strides = [1, 1, 1]} : vector<2x1x16xf32> to vector<2x1x12xf32>
    %497 = vector.extract_strided_slice %346 {offsets = [0, 0, 0], sizes = [2, 1, 4], strides = [1, 1, 1]} : vector<2x1x16xf32> to vector<2x1x4xf32>
    %498 = tpu.concatenate %496, %497 in 2 : vector<2x1x12xf32>, vector<2x1x4xf32> -> vector<2x1x16xf32>
    %c26 = arith.constant 26 : index
    %499 = memref.load %arg1[%c26] : memref<144xf32, #tpu.memory_space<smem>>
    %500 = vector.broadcast %499 : f32 to vector<2x1x16xf32>
    %501 = arith.mulf %500, %498 : vector<2x1x16xf32>
    %502 = arith.addf %483, %501 : vector<2x1x16xf32>
    %c62 = arith.constant 62 : index
    %503 = memref.load %arg1[%c62] : memref<144xf32, #tpu.memory_space<smem>>
    %504 = vector.broadcast %503 : f32 to vector<2x1x16xf32>
    %505 = arith.mulf %504, %498 : vector<2x1x16xf32>
    %506 = arith.addf %487, %505 : vector<2x1x16xf32>
    %c98 = arith.constant 98 : index
    %507 = memref.load %arg1[%c98] : memref<144xf32, #tpu.memory_space<smem>>
    %508 = vector.broadcast %507 : f32 to vector<2x1x16xf32>
    %509 = arith.mulf %508, %498 : vector<2x1x16xf32>
    %510 = arith.addf %491, %509 : vector<2x1x16xf32>
    %c134 = arith.constant 134 : index
    %511 = memref.load %arg1[%c134] : memref<144xf32, #tpu.memory_space<smem>>
    %512 = vector.broadcast %511 : f32 to vector<2x1x16xf32>
    %513 = arith.mulf %512, %498 : vector<2x1x16xf32>
    %514 = arith.addf %495, %513 : vector<2x1x16xf32>
    %c0_13 = arith.constant 0 : index
    %c3_14 = arith.constant 3 : index
    %c0_15 = arith.constant 0 : index
    %515 = vector.load %arg0[%c0_13, %c3_14, %c0_15] : memref<2x4x16xf32, #tpu.memory_space<vmem>>, vector<2x1x16xf32>
    %516 = vector.extract_strided_slice %515 {offsets = [0, 0, 12], sizes = [2, 1, 4], strides = [1, 1, 1]} : vector<2x1x16xf32> to vector<2x1x4xf32>
    %517 = vector.extract_strided_slice %515 {offsets = [0, 0, 0], sizes = [2, 1, 12], strides = [1, 1, 1]} : vector<2x1x16xf32> to vector<2x1x12xf32>
    %518 = tpu.concatenate %516, %517 in 2 : vector<2x1x4xf32>, vector<2x1x12xf32> -> vector<2x1x16xf32>
    %c27 = arith.constant 27 : index
    %519 = memref.load %arg1[%c27] : memref<144xf32, #tpu.memory_space<smem>>
    %520 = vector.broadcast %519 : f32 to vector<2x1x16xf32>
    %521 = arith.mulf %520, %518 : vector<2x1x16xf32>
    %522 = arith.addf %502, %521 : vector<2x1x16xf32>
    %c63 = arith.constant 63 : index
    %523 = memref.load %arg1[%c63] : memref<144xf32, #tpu.memory_space<smem>>
    %524 = vector.broadcast %523 : f32 to vector<2x1x16xf32>
    %525 = arith.mulf %524, %518 : vector<2x1x16xf32>
    %526 = arith.addf %506, %525 : vector<2x1x16xf32>
    %c99 = arith.constant 99 : index
    %527 = memref.load %arg1[%c99] : memref<144xf32, #tpu.memory_space<smem>>
    %528 = vector.broadcast %527 : f32 to vector<2x1x16xf32>
    %529 = arith.mulf %528, %518 : vector<2x1x16xf32>
    %530 = arith.addf %510, %529 : vector<2x1x16xf32>
    %c135 = arith.constant 135 : index
    %531 = memref.load %arg1[%c135] : memref<144xf32, #tpu.memory_space<smem>>
    %532 = vector.broadcast %531 : f32 to vector<2x1x16xf32>
    %533 = arith.mulf %532, %518 : vector<2x1x16xf32>
    %534 = arith.addf %514, %533 : vector<2x1x16xf32>
    %535 = vector.extract_strided_slice %515 {offsets = [0, 0, 13], sizes = [2, 1, 3], strides = [1, 1, 1]} : vector<2x1x16xf32> to vector<2x1x3xf32>
    %536 = vector.extract_strided_slice %515 {offsets = [0, 0, 0], sizes = [2, 1, 13], strides = [1, 1, 1]} : vector<2x1x16xf32> to vector<2x1x13xf32>
    %537 = tpu.concatenate %535, %536 in 2 : vector<2x1x3xf32>, vector<2x1x13xf32> -> vector<2x1x16xf32>
    %c28 = arith.constant 28 : index
    %538 = memref.load %arg1[%c28] : memref<144xf32, #tpu.memory_space<smem>>
    %539 = vector.broadcast %538 : f32 to vector<2x1x16xf32>
    %540 = arith.mulf %539, %537 : vector<2x1x16xf32>
    %541 = arith.addf %522, %540 : vector<2x1x16xf32>
    %c64 = arith.constant 64 : index
    %542 = memref.load %arg1[%c64] : memref<144xf32, #tpu.memory_space<smem>>
    %543 = vector.broadcast %542 : f32 to vector<2x1x16xf32>
    %544 = arith.mulf %543, %537 : vector<2x1x16xf32>
    %545 = arith.addf %526, %544 : vector<2x1x16xf32>
    %c100 = arith.constant 100 : index
    %546 = memref.load %arg1[%c100] : memref<144xf32, #tpu.memory_space<smem>>
    %547 = vector.broadcast %546 : f32 to vector<2x1x16xf32>
    %548 = arith.mulf %547, %537 : vector<2x1x16xf32>
    %549 = arith.addf %530, %548 : vector<2x1x16xf32>
    %c136 = arith.constant 136 : index
    %550 = memref.load %arg1[%c136] : memref<144xf32, #tpu.memory_space<smem>>
    %551 = vector.broadcast %550 : f32 to vector<2x1x16xf32>
    %552 = arith.mulf %551, %537 : vector<2x1x16xf32>
    %553 = arith.addf %534, %552 : vector<2x1x16xf32>
    %554 = vector.extract_strided_slice %515 {offsets = [0, 0, 14], sizes = [2, 1, 2], strides = [1, 1, 1]} : vector<2x1x16xf32> to vector<2x1x2xf32>
    %555 = vector.extract_strided_slice %515 {offsets = [0, 0, 0], sizes = [2, 1, 14], strides = [1, 1, 1]} : vector<2x1x16xf32> to vector<2x1x14xf32>
    %556 = tpu.concatenate %554, %555 in 2 : vector<2x1x2xf32>, vector<2x1x14xf32> -> vector<2x1x16xf32>
    %c29 = arith.constant 29 : index
    %557 = memref.load %arg1[%c29] : memref<144xf32, #tpu.memory_space<smem>>
    %558 = vector.broadcast %557 : f32 to vector<2x1x16xf32>
    %559 = arith.mulf %558, %556 : vector<2x1x16xf32>
    %560 = arith.addf %541, %559 : vector<2x1x16xf32>
    %c65 = arith.constant 65 : index
    %561 = memref.load %arg1[%c65] : memref<144xf32, #tpu.memory_space<smem>>
    %562 = vector.broadcast %561 : f32 to vector<2x1x16xf32>
    %563 = arith.mulf %562, %556 : vector<2x1x16xf32>
    %564 = arith.addf %545, %563 : vector<2x1x16xf32>
    %c101 = arith.constant 101 : index
    %565 = memref.load %arg1[%c101] : memref<144xf32, #tpu.memory_space<smem>>
    %566 = vector.broadcast %565 : f32 to vector<2x1x16xf32>
    %567 = arith.mulf %566, %556 : vector<2x1x16xf32>
    %568 = arith.addf %549, %567 : vector<2x1x16xf32>
    %c137 = arith.constant 137 : index
    %569 = memref.load %arg1[%c137] : memref<144xf32, #tpu.memory_space<smem>>
    %570 = vector.broadcast %569 : f32 to vector<2x1x16xf32>
    %571 = arith.mulf %570, %556 : vector<2x1x16xf32>
    %572 = arith.addf %553, %571 : vector<2x1x16xf32>
    %573 = vector.extract_strided_slice %515 {offsets = [0, 0, 15], sizes = [2, 1, 1], strides = [1, 1, 1]} : vector<2x1x16xf32> to vector<2x1x1xf32>
    %574 = vector.extract_strided_slice %515 {offsets = [0, 0, 0], sizes = [2, 1, 15], strides = [1, 1, 1]} : vector<2x1x16xf32> to vector<2x1x15xf32>
    %575 = tpu.concatenate %573, %574 in 2 : vector<2x1x1xf32>, vector<2x1x15xf32> -> vector<2x1x16xf32>
    %c30 = arith.constant 30 : index
    %576 = memref.load %arg1[%c30] : memref<144xf32, #tpu.memory_space<smem>>
    %577 = vector.broadcast %576 : f32 to vector<2x1x16xf32>
    %578 = arith.mulf %577, %575 : vector<2x1x16xf32>
    %579 = arith.addf %560, %578 : vector<2x1x16xf32>
    %c66 = arith.constant 66 : index
    %580 = memref.load %arg1[%c66] : memref<144xf32, #tpu.memory_space<smem>>
    %581 = vector.broadcast %580 : f32 to vector<2x1x16xf32>
    %582 = arith.mulf %581, %575 : vector<2x1x16xf32>
    %583 = arith.addf %564, %582 : vector<2x1x16xf32>
    %c102 = arith.constant 102 : index
    %584 = memref.load %arg1[%c102] : memref<144xf32, #tpu.memory_space<smem>>
    %585 = vector.broadcast %584 : f32 to vector<2x1x16xf32>
    %586 = arith.mulf %585, %575 : vector<2x1x16xf32>
    %587 = arith.addf %568, %586 : vector<2x1x16xf32>
    %c138 = arith.constant 138 : index
    %588 = memref.load %arg1[%c138] : memref<144xf32, #tpu.memory_space<smem>>
    %589 = vector.broadcast %588 : f32 to vector<2x1x16xf32>
    %590 = arith.mulf %589, %575 : vector<2x1x16xf32>
    %591 = arith.addf %572, %590 : vector<2x1x16xf32>
    %c31 = arith.constant 31 : index
    %592 = memref.load %arg1[%c31] : memref<144xf32, #tpu.memory_space<smem>>
    %593 = vector.broadcast %592 : f32 to vector<2x1x16xf32>
    %594 = arith.mulf %593, %515 : vector<2x1x16xf32>
    %595 = arith.addf %579, %594 : vector<2x1x16xf32>
    %c67 = arith.constant 67 : index
    %596 = memref.load %arg1[%c67] : memref<144xf32, #tpu.memory_space<smem>>
    %597 = vector.broadcast %596 : f32 to vector<2x1x16xf32>
    %598 = arith.mulf %597, %515 : vector<2x1x16xf32>
    %599 = arith.addf %583, %598 : vector<2x1x16xf32>
    %c103 = arith.constant 103 : index
    %600 = memref.load %arg1[%c103] : memref<144xf32, #tpu.memory_space<smem>>
    %601 = vector.broadcast %600 : f32 to vector<2x1x16xf32>
    %602 = arith.mulf %601, %515 : vector<2x1x16xf32>
    %603 = arith.addf %587, %602 : vector<2x1x16xf32>
    %c139 = arith.constant 139 : index
    %604 = memref.load %arg1[%c139] : memref<144xf32, #tpu.memory_space<smem>>
    %605 = vector.broadcast %604 : f32 to vector<2x1x16xf32>
    %606 = arith.mulf %605, %515 : vector<2x1x16xf32>
    %607 = arith.addf %591, %606 : vector<2x1x16xf32>
    %608 = vector.extract_strided_slice %515 {offsets = [0, 0, 1], sizes = [2, 1, 15], strides = [1, 1, 1]} : vector<2x1x16xf32> to vector<2x1x15xf32>
    %609 = vector.extract_strided_slice %515 {offsets = [0, 0, 0], sizes = [2, 1, 1], strides = [1, 1, 1]} : vector<2x1x16xf32> to vector<2x1x1xf32>
    %610 = tpu.concatenate %608, %609 in 2 : vector<2x1x15xf32>, vector<2x1x1xf32> -> vector<2x1x16xf32>
    %c32 = arith.constant 32 : index
    %611 = memref.load %arg1[%c32] : memref<144xf32, #tpu.memory_space<smem>>
    %612 = vector.broadcast %611 : f32 to vector<2x1x16xf32>
    %613 = arith.mulf %612, %610 : vector<2x1x16xf32>
    %614 = arith.addf %595, %613 : vector<2x1x16xf32>
    %c68 = arith.constant 68 : index
    %615 = memref.load %arg1[%c68] : memref<144xf32, #tpu.memory_space<smem>>
    %616 = vector.broadcast %615 : f32 to vector<2x1x16xf32>
    %617 = arith.mulf %616, %610 : vector<2x1x16xf32>
    %618 = arith.addf %599, %617 : vector<2x1x16xf32>
    %c104 = arith.constant 104 : index
    %619 = memref.load %arg1[%c104] : memref<144xf32, #tpu.memory_space<smem>>
    %620 = vector.broadcast %619 : f32 to vector<2x1x16xf32>
    %621 = arith.mulf %620, %610 : vector<2x1x16xf32>
    %622 = arith.addf %603, %621 : vector<2x1x16xf32>
    %c140 = arith.constant 140 : index
    %623 = memref.load %arg1[%c140] : memref<144xf32, #tpu.memory_space<smem>>
    %624 = vector.broadcast %623 : f32 to vector<2x1x16xf32>
    %625 = arith.mulf %624, %610 : vector<2x1x16xf32>
    %626 = arith.addf %607, %625 : vector<2x1x16xf32>
    %627 = vector.extract_strided_slice %515 {offsets = [0, 0, 2], sizes = [2, 1, 14], strides = [1, 1, 1]} : vector<2x1x16xf32> to vector<2x1x14xf32>
    %628 = vector.extract_strided_slice %515 {offsets = [0, 0, 0], sizes = [2, 1, 2], strides = [1, 1, 1]} : vector<2x1x16xf32> to vector<2x1x2xf32>
    %629 = tpu.concatenate %627, %628 in 2 : vector<2x1x14xf32>, vector<2x1x2xf32> -> vector<2x1x16xf32>
    %c33 = arith.constant 33 : index
    %630 = memref.load %arg1[%c33] : memref<144xf32, #tpu.memory_space<smem>>
    %631 = vector.broadcast %630 : f32 to vector<2x1x16xf32>
    %632 = arith.mulf %631, %629 : vector<2x1x16xf32>
    %633 = arith.addf %614, %632 : vector<2x1x16xf32>
    %c69 = arith.constant 69 : index
    %634 = memref.load %arg1[%c69] : memref<144xf32, #tpu.memory_space<smem>>
    %635 = vector.broadcast %634 : f32 to vector<2x1x16xf32>
    %636 = arith.mulf %635, %629 : vector<2x1x16xf32>
    %637 = arith.addf %618, %636 : vector<2x1x16xf32>
    %c105 = arith.constant 105 : index
    %638 = memref.load %arg1[%c105] : memref<144xf32, #tpu.memory_space<smem>>
    %639 = vector.broadcast %638 : f32 to vector<2x1x16xf32>
    %640 = arith.mulf %639, %629 : vector<2x1x16xf32>
    %641 = arith.addf %622, %640 : vector<2x1x16xf32>
    %c141 = arith.constant 141 : index
    %642 = memref.load %arg1[%c141] : memref<144xf32, #tpu.memory_space<smem>>
    %643 = vector.broadcast %642 : f32 to vector<2x1x16xf32>
    %644 = arith.mulf %643, %629 : vector<2x1x16xf32>
    %645 = arith.addf %626, %644 : vector<2x1x16xf32>
    %646 = vector.extract_strided_slice %515 {offsets = [0, 0, 3], sizes = [2, 1, 13], strides = [1, 1, 1]} : vector<2x1x16xf32> to vector<2x1x13xf32>
    %647 = vector.extract_strided_slice %515 {offsets = [0, 0, 0], sizes = [2, 1, 3], strides = [1, 1, 1]} : vector<2x1x16xf32> to vector<2x1x3xf32>
    %648 = tpu.concatenate %646, %647 in 2 : vector<2x1x13xf32>, vector<2x1x3xf32> -> vector<2x1x16xf32>
    %c34 = arith.constant 34 : index
    %649 = memref.load %arg1[%c34] : memref<144xf32, #tpu.memory_space<smem>>
    %650 = vector.broadcast %649 : f32 to vector<2x1x16xf32>
    %651 = arith.mulf %650, %648 : vector<2x1x16xf32>
    %652 = arith.addf %633, %651 : vector<2x1x16xf32>
    %c70 = arith.constant 70 : index
    %653 = memref.load %arg1[%c70] : memref<144xf32, #tpu.memory_space<smem>>
    %654 = vector.broadcast %653 : f32 to vector<2x1x16xf32>
    %655 = arith.mulf %654, %648 : vector<2x1x16xf32>
    %656 = arith.addf %637, %655 : vector<2x1x16xf32>
    %c106 = arith.constant 106 : index
    %657 = memref.load %arg1[%c106] : memref<144xf32, #tpu.memory_space<smem>>
    %658 = vector.broadcast %657 : f32 to vector<2x1x16xf32>
    %659 = arith.mulf %658, %648 : vector<2x1x16xf32>
    %660 = arith.addf %641, %659 : vector<2x1x16xf32>
    %c142 = arith.constant 142 : index
    %661 = memref.load %arg1[%c142] : memref<144xf32, #tpu.memory_space<smem>>
    %662 = vector.broadcast %661 : f32 to vector<2x1x16xf32>
    %663 = arith.mulf %662, %648 : vector<2x1x16xf32>
    %664 = arith.addf %645, %663 : vector<2x1x16xf32>
    %665 = vector.extract_strided_slice %515 {offsets = [0, 0, 4], sizes = [2, 1, 12], strides = [1, 1, 1]} : vector<2x1x16xf32> to vector<2x1x12xf32>
    %666 = vector.extract_strided_slice %515 {offsets = [0, 0, 0], sizes = [2, 1, 4], strides = [1, 1, 1]} : vector<2x1x16xf32> to vector<2x1x4xf32>
    %667 = tpu.concatenate %665, %666 in 2 : vector<2x1x12xf32>, vector<2x1x4xf32> -> vector<2x1x16xf32>
    %c35 = arith.constant 35 : index
    %668 = memref.load %arg1[%c35] : memref<144xf32, #tpu.memory_space<smem>>
    %669 = vector.broadcast %668 : f32 to vector<2x1x16xf32>
    %670 = arith.mulf %669, %667 : vector<2x1x16xf32>
    %671 = arith.addf %652, %670 : vector<2x1x16xf32>
    %c71 = arith.constant 71 : index
    %672 = memref.load %arg1[%c71] : memref<144xf32, #tpu.memory_space<smem>>
    %673 = vector.broadcast %672 : f32 to vector<2x1x16xf32>
    %674 = arith.mulf %673, %667 : vector<2x1x16xf32>
    %675 = arith.addf %656, %674 : vector<2x1x16xf32>
    %c107 = arith.constant 107 : index
    %676 = memref.load %arg1[%c107] : memref<144xf32, #tpu.memory_space<smem>>
    %677 = vector.broadcast %676 : f32 to vector<2x1x16xf32>
    %678 = arith.mulf %677, %667 : vector<2x1x16xf32>
    %679 = arith.addf %660, %678 : vector<2x1x16xf32>
    %c143 = arith.constant 143 : index
    %680 = memref.load %arg1[%c143] : memref<144xf32, #tpu.memory_space<smem>>
    %681 = vector.broadcast %680 : f32 to vector<2x1x16xf32>
    %682 = arith.mulf %681, %667 : vector<2x1x16xf32>
    %683 = arith.addf %664, %682 : vector<2x1x16xf32>
    %c0_16 = arith.constant 0 : index
    %c0_17 = arith.constant 0 : index
    %c0_18 = arith.constant 0 : index
    %684 = vector.load %arg3[%c0_16, %c0_17, %c0_18] : memref<2x4x16xf32, #tpu.memory_space<vmem>>, vector<2x1x16xf32>
    tpu.vector_store %arg3[%c0_16, %c0_17, %c0_18], %671 {strides = array<i32>} : memref<2x4x16xf32, #tpu.memory_space<vmem>>, vector<2x1x16xf32>,
    %c0_19 = arith.constant 0 : index
    %c1_20 = arith.constant 1 : index
    %c0_21 = arith.constant 0 : index
    %685 = vector.load %arg3[%c0_19, %c1_20, %c0_21] : memref<2x4x16xf32, #tpu.memory_space<vmem>>, vector<2x1x16xf32>
    tpu.vector_store %arg3[%c0_19, %c1_20, %c0_21], %675 {strides = array<i32>} : memref<2x4x16xf32, #tpu.memory_space<vmem>>, vector<2x1x16xf32>,
    %c0_22 = arith.constant 0 : index
    %c2_23 = arith.constant 2 : index
    %c0_24 = arith.constant 0 : index
    %686 = vector.load %arg3[%c0_22, %c2_23, %c0_24] : memref<2x4x16xf32, #tpu.memory_space<vmem>>, vector<2x1x16xf32>
    tpu.vector_store %arg3[%c0_22, %c2_23, %c0_24], %679 {strides = array<i32>} : memref<2x4x16xf32, #tpu.memory_space<vmem>>, vector<2x1x16xf32>,
    %c0_25 = arith.constant 0 : index
    %c3_26 = arith.constant 3 : index
    %c0_27 = arith.constant 0 : index
    %687 = vector.load %arg3[%c0_25, %c3_26, %c0_27] : memref<2x4x16xf32, #tpu.memory_space<vmem>>, vector<2x1x16xf32>
    tpu.vector_store %arg3[%c0_25, %c3_26, %c0_27], %683 {strides = array<i32>} : memref<2x4x16xf32, #tpu.memory_space<vmem>>, vector<2x1x16xf32>,
    return
  }
}

</mosaic_0001>

<bundles_post_ra>
// kernel: tpu_custom_call.1
= control target key start
LH: loop header
LB: loop body
LE: loop exit
PB: predicated region body
PF: predicated region fallthrough
CT: control target
= control target key end

     0   :  { %s2967_s0 = inlined_call_operand.hbm [shape: f32[2,4,16], index: 0, kind: input, shape index: {}]   ;;  %s2968_s1 = inlined_call_operand.vmem [shape: f32[144], index: 1, kind: input, shape index: {}]   ;;  %s2969_s2 = inlined_call_operand.vmem [shape: f32[4], index: 2, kind: input, shape index: {}]   ;;  %s2970_s3 = inlined_call_operand.hbm [shape: f32[2,4,16], index: 3, kind: output, shape index: {}]  }
   0x1   :  { %3026 = sst [smem:[#allocation22_spill]] %s2970_s3 }
   0x2   :  { %8 = vsyncpa [#allocation3], 0 }
   0x3   :  { %9 = vsyncpa [#allocation5], 0 }
   0x4   :  { %10 = vsyncpa [#allocation8], 0 }
   0x5   :  { %11 = vsyncpa [#allocation4], 0  ;;  %s1672_s12 = smov [#allocation2]   ;;  %s30_s16 = sshll.u32 %s2968_s1, 4  ;;  %s31_s16 = int_to_ptr.vmem [resolvable:$true] %s30_s16 }
   0x6   :  { %s17_s13 = sshll.u32 %s1672_s12, 4  ;;  %s1596_s19 = scalar_lea.hbm %s2967_s0, 128  ;;  %s18_s13 = int_to_ptr.vmem [resolvable:$true] %s17_s13 }
   0x7   :  { %p1597_p0 = scmp.ne.s32.totalorder %s2967_s0, %s1596_s19  ;;  %p1600_p1 = scmp.lt.u32.totalorder %s1596_s19, %s2967_s0 }
   0x9   :  { %p1602_p2 = pnand %p1600_p1, %p1597_p0 }
   0xb   :  { %1605 = shalt.err (!%p1602_p2)
}
   0xc   :  { %s1606_s24 = scalar_lea.vmem %s18_s13, 128  ;;  %p1611_p4 = scmp.lt.s32.totalorder %s18_s13, %s18_s13 }
   0xd   :  { %p1607_p3 = scmp.ne.s32.totalorder %s18_s13, %s1606_s24  ;;  %p1612_p5 = scmp.lt.s32.totalorder %s1606_s24, %s1606_s24 }
   0xf   :  { %p1613_p6 = por %p1612_p5, %p1611_p4 }
  0x11   :  { %p1614_p7 = pnand %p1613_p6, %p1607_p3 }
  0x13   :  { %1617 = shalt.err (!%p1614_p7)
}
  0x14   :  { %s2971_s1 = smov 64   ;;  %s3000_s25 = smov 4  }
  0x15   :  { %23 = dma.hbm_to_vmem [thread:$0]  %s2967_s0, 128, %s18_s13, [#allocation3], %s2971_s1, %s2971_s1, %s3000_s25  }
  0x16   :  { %s1618_s28 = scalar_lea.vmem %s31_s16, 32  ;;  %p1623_p9 = scmp.lt.s32.totalorder %s31_s16, %s31_s16 }
  0x17   :  { %p1619_p8 = scmp.ne.s32.totalorder %s31_s16, %s1618_s28  ;;  %p1624_p10 = scmp.lt.s32.totalorder %s1618_s28, %s1618_s28 }
  0x19   :  { %p1625_p11 = por %p1624_p10, %p1623_p9 }
  0x1b   :  { %p1626_p12 = pnand %p1625_p11, %p1619_p8 }
  0x1d   :  { %1629 = shalt.err (!%p1626_p12)
}
  0x1e   :  { %s1675_s29 = smov [#allocation6]   ;;  %s40_s5 = sshll.u32 %s2969_s2, 4  ;;  %s41_s5 = int_to_ptr.vmem [resolvable:$true] %s40_s5 }
  0x1f   :  { %33 = dma.vmem_to_smem %s31_s16, 32, %s1675_s29, [#allocation5]  }
  0x20   :  { %s1630_s6 = scalar_lea.vmem %s41_s5, 16  ;;  %p1635_p0 = scmp.lt.s32.totalorder %s41_s5, %s41_s5 }
  0x21   :  { %p1631_p13 = scmp.ne.s32.totalorder %s41_s5, %s1630_s6  ;;  %p1636_p1 = scmp.lt.s32.totalorder %s1630_s6, %s1630_s6 }
  0x23   :  { %p1637_p2 = por %p1636_p1, %p1635_p0 }
  0x25   :  { %p1638_p3 = pnand %p1637_p2, %p1631_p13 }
  0x27   :  { %1641 = shalt.err (!%p1638_p3)
}
  0x28   :  { %s1676_s0 = smov [#allocation7]  }
  0x29   :  { %43 = dma.vmem_to_smem %s41_s5, 16, %s1676_s0, [#allocation8]  }
  0x2a   :  { %1664 = dma.done.wait [#allocation3], 128  }
  0x2b   :  { %1665 = vsyncadd [#allocation3], 4294967168 }
  0x2c   :  { %1666 = dma.done.wait [#allocation5], 32  }
  0x2d   :  { %1667 = vsyncadd [#allocation5], 4294967264 }
  0x2e   :  { %1668 = dma.done.wait [#allocation8], 16  }
  0x2f   :  { %1669 = vsyncadd [#allocation8], 4294967280 }
  0x30   :  { %53 = sfence }
  0x31   :  { %v1734_v0 = vld [vmem:[#allocation2] sm:$0x1]  ;;  %s3003_s2 = smov 116   ;;  %v1740_v1 = vld [vmem:[#allocation2 + $0x4] sm:$0x1]  ;;  %s2998_s7 = smov 115  }
  0x32   :  { %72 = vrot.lane.b32.xlu1 %v1734_v0, %s3000_s25  ;;  %66 = vrot.lane.b32.xlu0 %v1734_v0, %s3003_s2  ;;  %s2996_s8 = smov 3   ;;  %s2994_s9 = smov 114   ;;  %v1802_v2 = vld [vmem:[#allocation2 + $0x5] sm:$0x1]  ;;  %v1804_v3 = vld [vmem:[#allocation2 + $0x1] sm:$0x1] }
  0x33   :  { %s2992_s10 = smov 2   ;;  %s2990_s11 = smov 113   ;;  %v1918_v10 = vld [vmem:[#allocation2 + $0x6] sm:$0x1]  ;;  %v1928_v13 = vld [vmem:[#allocation2 + $0x2] sm:$0x1] }
  0x34   :  { %s2986_s12 = smov 1   ;;  %s2984_s13 = smov 127   ;;  %vm78_vm0 = vcmask 31744   ;;  %vm117_vm1 = vcmask 23552   ;;  %vm156_vm2 = vcmask 15360   ;;  %vm195_vm3 = vcmask 7168  }
  0x35   :  { %s2982_s14 = smov 15   ;;  %s2980_s15 = smov 126   ;;  %vm258_vm4 = vcmask 121856   ;;  %vm297_vm5 = vcmask 113664   ;;  %vm336_vm6 = vcmask 105472   ;;  %vm375_vm7 = vcmask 97280  }
  0x36   :  { %74 = vrot.lane.b32.xlu1 %v1740_v1, %s3000_s25  ;;  %68 = vrot.lane.b32.xlu0 %v1740_v1, %s3003_s2  ;;  %s2978_s16 = smov 14   ;;  %s2974_s17 = smov 125   ;;  %vm1398_vm8 = vcmask 122880  }
  0x37   :  { %s2972_s18 = smov 13   ;;  %s2976_s19 = smov 124  }
  0x38   :  { %s2988_s20 = smov 12   ;;  %s1862_s21 = sld [smem:[#allocation6]] }
  0x39   :  { %s1864_s22 = sld [smem:[#allocation6 + $0x24]]  ;;  %s1868_s23 = sld [smem:[#allocation6 + $0x48]] }
  0x3a   :  { %107 = vrot.lane.b32.xlu1 %v1740_v1, %s2998_s7  ;;  %105 = vrot.lane.b32.xlu0 %v1734_v0, %s2998_s7  ;;  %s1870_s24 = sld [smem:[#allocation6 + $0x6c]]  ;;  %s1874_s26 = sld [smem:[#allocation7]] }
  0x3b   :  { %s1876_s27 = sld [smem:[#allocation7 + $0x1]]  ;;  %s1882_s28 = sld [smem:[#allocation7 + $0x2]] }
  0x3c   :  { %s1884_s29 = sld [smem:[#allocation7 + $0x3]]  ;;  %s1888_s30 = sld [smem:[#allocation6 + $0x1]] }
  0x3d   :  { %s1890_s4 = sld [smem:[#allocation6 + $0x25]]  ;;  %s1894_s5 = sld [smem:[#allocation6 + $0x49]] }
  0x3e   :  { %113 = vrot.lane.b32.xlu1 %v1740_v1, %s2996_s8  ;;  %111 = vrot.lane.b32.xlu0 %v1734_v0, %s2996_s8  ;;  %s1896_s6 = sld [smem:[#allocation6 + $0x6d]]  ;;  %s1902_s0 = sld [smem:[#allocation6 + $0x2]]  ;;  %v82_v14 = vstv %s1862_s21 }
  0x3f   :  { %s1904_s1 = sld [smem:[#allocation6 + $0x26]]  ;;  %v88_v15 = vstv %s1864_s22  ;;  %v94_v16 = vstv %s1868_s23  ;;  %s1962_s3 = sld [smem:[#allocation6 + $0x2a]] }
  0x40   :  { %3027 = sst [smem:[#allocation14_spill]] %s1870_s24  ;;  %v100_v17 = vstv %s1870_s24  ;;  %v55_v18 = vstv %s1874_s26  ;;  %s1970_s24 = sld [smem:[#allocation6 + $0x72]] }
  0x41   :  { %3028 = sst [smem:[#allocation15_spill]] %s1876_s27  ;;  %v57_v19 = vstv %s1876_s27  ;;  %v59_v22 = vstv %s1882_s28  ;;  %s3034_s27 = smov 4  }
  0x42   :  { %146 = vrot.lane.b32.xlu1 %v1740_v1, %s2994_s9  ;;  %144 = vrot.lane.b32.xlu0 %v1734_v0, %s2994_s9  ;;  %3029 = sst [smem:[#allocation16_spill]] %s1882_s28  ;;  %v61_v23 = vstv %s1884_s29  ;;  %v121_v24 = vstv %s1888_s30  ;;  %s1977_s28 = sld [smem:[#allocation6 + $0x7]] }
  0x43   :  { %3030 = sst [smem:[#allocation17_spill]] %s1884_s29  ;;  %v127_v25 = vstv %s1890_s4  ;;  %v133_v26 = vstv %s1894_s5  ;;  %s3043_s22 = smov 114  }
  0x44   :  { %3031 = sst [smem:[#allocation18_spill]] %s1894_s5  ;;  %v139_v27 = vstv %s1896_s6  ;;  %v160_v28 = vstv %s1902_s0  ;;  %s1979_s29 = sld [smem:[#allocation6 + $0x2b]] }
  0x45   :  { %3032 = sst [smem:[#allocation19_spill]] %s1896_s6  ;;  %s1986_s6 = sld [smem:[#allocation6 + $0x4f]]  ;;  %v166_v32 = vstv %s1904_s1  ;;  %v307_v59 = vstv %s1962_s3 }
  0x46   :  { %152 = vrot.lane.b32.xlu1 %v1740_v1, %s2992_s10  ;;  %150 = vrot.lane.b32.xlu0 %v1734_v0, %s2992_s10  ;;  %3033 = sst [smem:[#allocation20_spill]] %s1902_s0  ;;  %s1988_s5 = sld [smem:[#allocation6 + $0x73]] }
  0x47   :  { %s1998_s0 = sld [smem:[#allocation6 + $0x8]]  ;;  %s3046_s26 = smov 2  }
  0x48   :  { %3035 = sst [smem:[#allocation21_spill]] %s1977_s28  ;;  %s3047_s28 = smov 113  }
  0x49   :  { %s3048_s1 = smov 1   ;;  %s3065_s3 = smov 14  }
  0x4a   :  { %185 = vrot.lane.b32.xlu1 %v1740_v1, %s2990_s11  ;;  %183 = vrot.lane.b32.xlu0 %v1734_v0, %s2990_s11  ;;  %s3074_s30 = smov 124   ;;  %s2310_s4 = sld [smem:[#allocation6 + $0xb]] }
  0x4b   :  { %s2334_s21 = sld [smem:[#allocation6 + $0xd]]  ;;  %s2336_s23 = sld [smem:[#allocation6 + $0x31]] }
  0x4e   :  { %191 = vrot.lane.b32.xlu1 %v1740_v1, %s2986_s12  ;;  %189 = vrot.lane.b32.xlu0 %v1734_v0, %s2986_s12 }
  0x52   :  { %248 = vrot.lane.b32.xlu1 %v1740_v1, %s2984_s13  ;;  %246 = vrot.lane.b32.xlu0 %v1734_v0, %s2984_s13 }
  0x56   :  { %254 = vrot.lane.b32.xlu1 %v1740_v1, %s2982_s14  ;;  %252 = vrot.lane.b32.xlu0 %v1734_v0, %s2982_s14 }
  0x5a   :  { %287 = vrot.lane.b32.xlu1 %v1740_v1, %s2980_s15  ;;  %285 = vrot.lane.b32.xlu0 %v1734_v0, %s2980_s15 }
  0x5e   :  { %293 = vrot.lane.b32.xlu1 %v1740_v1, %s2978_s16  ;;  %291 = vrot.lane.b32.xlu0 %v1734_v0, %s2978_s16 }
  0x62   :  { %326 = vrot.lane.b32.xlu1 %v1740_v1, %s2974_s17  ;;  %324 = vrot.lane.b32.xlu0 %v1734_v0, %s2974_s17 }
  0x66   :  { %332 = vrot.lane.b32.xlu1 %v1740_v1, %s2972_s18  ;;  %330 = vrot.lane.b32.xlu0 %v1734_v0, %s2972_s18 }
  0x6a   :  { %365 = vrot.lane.b32.xlu1 %v1740_v1, %s2976_s19  ;;  %363 = vrot.lane.b32.xlu0 %v1734_v0, %s2976_s19 }
  0x6e   :  { %371 = vrot.lane.b32.xlu1 %v1740_v1, %s2988_s20  ;;  %369 = vrot.lane.b32.xlu0 %v1734_v0, %s2988_s20 }
  0x72   :  { %408 = vrot.lane.b32.xlu1 %v1802_v2, %s3003_s2  ;;  %406 = vrot.lane.b32.xlu0 %v1804_v3, %s3003_s2 }
  0x76   :  { %414 = vrot.lane.b32.xlu1 %v1802_v2, %s3000_s25  ;;  %412 = vrot.lane.b32.xlu0 %v1804_v3, %s3000_s25  ;;  %s1960_s25 = sld [smem:[#allocation6 + $0x6]] }
  0x7a   :  { %446 = vrot.lane.b32.xlu1 %v1802_v2, %s2998_s7  ;;  %444 = vrot.lane.b32.xlu0 %v1804_v3, %s2998_s7  ;;  %s1950_s7 = sld [smem:[#allocation6 + $0x71]] }
  0x7c   :  { %v301_v58 = vstv %s1960_s25  ;;  %s2256_s25 = sld [smem:[#allocation6 + $0x9]] }
  0x7e   :  { %452 = vrot.lane.b32.xlu1 %v1802_v2, %s2996_s8  ;;  %450 = vrot.lane.b32.xlu0 %v1804_v3, %s2996_s8  ;;  %s1948_s8 = sld [smem:[#allocation6 + $0x4d]] }
  0x80   :  { %v280_v53 = vstv %s1950_s7  ;;  %s3050_s7 = smov 15  }
  0x82   :  { %484 = vrot.lane.b32.xlu1 %v1802_v2, %s2994_s9  ;;  %482 = vrot.lane.b32.xlu0 %v1804_v3, %s2994_s9  ;;  %s1942_s9 = sld [smem:[#allocation6 + $0x29]] }
  0x84   :  { %v274_v52 = vstv %s1948_s8  ;;  %s3051_s8 = sld [smem:[#allocation21_spill]] }
  0x86   :  { %490 = vrot.lane.b32.xlu1 %v1802_v2, %s2992_s10  ;;  %488 = vrot.lane.b32.xlu0 %v1804_v3, %s2992_s10  ;;  %s1940_s10 = sld [smem:[#allocation6 + $0x5]] }
  0x88   :  { %v268_v49 = vstv %s1942_s9  ;;  %s3054_s9 = smov 126  }
  0x8a   :  { %522 = vrot.lane.b32.xlu1 %v1802_v2, %s2990_s11  ;;  %520 = vrot.lane.b32.xlu0 %v1804_v3, %s2990_s11  ;;  %s1936_s11 = sld [smem:[#allocation6 + $0x6f]] }
  0x8c   :  { %v262_v48 = vstv %s1940_s10  ;;  %s2262_s10 = sld [smem:[#allocation6 + $0x51]] }
  0x8e   :  { %528 = vrot.lane.b32.xlu1 %v1802_v2, %s2986_s12  ;;  %526 = vrot.lane.b32.xlu0 %v1804_v3, %s2986_s12  ;;  %s1932_s12 = sld [smem:[#allocation6 + $0x70]] }
  0x90   :  { %v217_v41 = vstv %s1936_s11  ;;  %s3049_s11 = smov 127  }
  0x92   :  { %584 = vrot.lane.b32.xlu1 %v1802_v2, %s2984_s13  ;;  %582 = vrot.lane.b32.xlu0 %v1804_v3, %s2984_s13  ;;  %s1930_s13 = sld [smem:[#allocation6 + $0x27]] }
  0x94   :  { %v241_v37 = vstv %s1932_s12  ;;  %s3037_s12 = smov 3  }
  0x95   :  { %v2028_v47 = vmul.f32 %v241_v37, %v1740_v1  ;;  %v2046_v57 = vmul.f32 %v241_v37, %v1734_v0 }
  0x96   :  { %590 = vrot.lane.b32.xlu1 %v1802_v2, %s2982_s14  ;;  %588 = vrot.lane.b32.xlu0 %v1804_v3, %s2982_s14  ;;  %s1922_s14 = sld [smem:[#allocation6 + $0x4c]] }
  0x98   :  { %v205_v39 = vstv %s1930_s13  ;;  %s2264_s13 = sld [smem:[#allocation6 + $0x75]] }
  0x9a   :  { %622 = vrot.lane.b32.xlu1 %v1802_v2, %s2980_s15  ;;  %620 = vrot.lane.b32.xlu0 %v1804_v3, %s2980_s15  ;;  %s1920_s15 = sld [smem:[#allocation6 + $0x28]] }
  0x9c   :  { %v235_v31 = vstv %s1922_s14  ;;  %s2004_s14 = sld [smem:[#allocation6 + $0x2c]] }
  0x9d   :  { %v2017_v44 = vmul.f32 %v235_v31, %v1740_v1  ;;  %v2040_v55 = vmul.f32 %v235_v31, %v1734_v0 }
  0x9e   :  { %628 = vrot.lane.b32.xlu1 %v1802_v2, %s2978_s16  ;;  %626 = vrot.lane.b32.xlu0 %v1804_v3, %s2978_s16  ;;  %s1914_s16 = sld [smem:[#allocation6 + $0x4]] }
  0xa0   :  { %v229_v30 = vstv %s1920_s15  ;;  %s2006_s15 = sld [smem:[#allocation6 + $0x50]] }
  0xa1   :  { %v2014_v43 = vmul.f32 %v229_v30, %v1740_v1  ;;  %v2037_v54 = vmul.f32 %v229_v30, %v1734_v0 }
  0xa2   :  { %660 = vrot.lane.b32.xlu1 %v1802_v2, %s2974_s17  ;;  %658 = vrot.lane.b32.xlu0 %v1804_v3, %s2974_s17  ;;  %s1908_s17 = sld [smem:[#allocation6 + $0x6e]] }
  0xa4   :  { %v1858_v4 = vpop.permute.xlu1 %72  ;;  %v1860_v5 = vpop.permute.xlu0 %66  ;;  %v223_v29 = vstv %s1914_s16  ;;  %s3036_s16 = smov 115  }
  0xa5   :  { %v2011_v42 = vmul.f32 %v223_v29, %v1740_v1  ;;  %v2020_v45 = vmul.f32 %v223_v29, %v1734_v0  ;;  %v79_v46 = vsel %vm78_vm0, %v1860_v5, %v1858_v4 }
  0xa6   :  { %666 = vrot.lane.b32.xlu1 %v1802_v2, %s2972_s18  ;;  %664 = vrot.lane.b32.xlu0 %v1804_v3, %s2972_s18  ;;  %s1906_s18 = sld [smem:[#allocation6 + $0x4a]]  ;;  %v83_v60 = vmul.f32 %v82_v14, %v79_v46  ;;  %v89_v1 = vmul.f32 %v88_v15, %v79_v46  ;;  %v95_v5 = vmul.f32 %v94_v16, %v79_v46 }
  0xa7   :  { %v101_v63 = vmul.f32 %v100_v17, %v79_v46 }
  0xa8   :  { %v1878_v6 = vpop.permute.xlu1 %74  ;;  %v1880_v7 = vpop.permute.xlu0 %68  ;;  %v178_v34 = vstv %s1908_s17  ;;  %s3069_s17 = smov 125  }
  0xa9   :  { %v80_v56 = vsel %vm78_vm0, %v1880_v7, %v1878_v6 }
  0xaa   :  { %698 = vrot.lane.b32.xlu1 %v1802_v2, %s2976_s19  ;;  %696 = vrot.lane.b32.xlu0 %v1804_v3, %s2976_s19  ;;  %s1912_s19 = sld [smem:[#allocation6 + $0x3]]  ;;  %v84_v6 = vmul.f32 %v82_v14, %v80_v56  ;;  %v90_v7 = vmul.f32 %v88_v15, %v80_v56  ;;  %v96_v29 = vmul.f32 %v94_v16, %v80_v56 }
  0xab   :  { %v85_v15 = vadd.f32 %v83_v60, %v55_v18  ;;  %v102_v62 = vmul.f32 %v100_v17, %v80_v56 }
  0xac   :  { %v1898_v8 = vpop.permute.xlu1 %107  ;;  %v1900_v9 = vpop.permute.xlu0 %105  ;;  %v172_v33 = vstv %s1906_s18  ;;  %v98_v56 = vadd.f32 %v96_v29, %v59_v22  ;;  %s3073_s18 = smov 13  }
  0xae   :  { %704 = vrot.lane.b32.xlu1 %v1802_v2, %s2988_s20  ;;  %702 = vrot.lane.b32.xlu0 %v1804_v3, %s2988_s20  ;;  %s1934_s20 = sld [smem:[#allocation6 + $0x4b]] }
  0xb0   :  { %v1924_v11 = vpop.permute.xlu1 %113  ;;  %v1926_v12 = vpop.permute.xlu0 %111  ;;  %v199_v38 = vstv %s1912_s19  ;;  %s2291_s19 = sld [smem:[#allocation6 + $0xa]] }
  0xb1   :  { %v119_v30 = vsel %vm117_vm1, %v1898_v8, %v1924_v11  ;;  %v118_v8 = vsel %vm117_vm1, %v1900_v9, %v1926_v12  ;;  %v91_v11 = vadd.f32 %v89_v1, %v57_v19  ;;  %v86_v9 = vadd.f32 %v84_v6, %v55_v18 }
  0xb2   :  { %740 = vrot.lane.b32.xlu1 %v1918_v10, %s3003_s2  ;;  %738 = vrot.lane.b32.xlu0 %v1928_v13, %s3003_s2  ;;  %s1968_s2 = sld [smem:[#allocation6 + $0x4e]]  ;;  %v123_v16 = vmul.f32 %v121_v24, %v119_v30  ;;  %v129_v46 = vmul.f32 %v127_v25, %v119_v30  ;;  %v135_v17 = vmul.f32 %v133_v26, %v119_v30 }
  0xb3   :  { %v92_v12 = vadd.f32 %v90_v7, %v57_v19  ;;  %v141_v60 = vmul.f32 %v139_v27, %v119_v30  ;;  %v122_v14 = vmul.f32 %v121_v24, %v118_v8  ;;  %v128_v4 = vmul.f32 %v127_v25, %v118_v8 }
  0xb4   :  { %v1956_v20 = vpop.permute.xlu1 %146  ;;  %v1958_v21 = vpop.permute.xlu0 %144  ;;  %v211_v40 = vstv %s1934_s20  ;;  %v134_v61 = vmul.f32 %v133_v26, %v118_v8  ;;  %v97_v19 = vadd.f32 %v95_v5, %v59_v22  ;;  %v103_v6 = vadd.f32 %v101_v63, %v61_v23  ;;  %s2293_s20 = sld [smem:[#allocation6 + $0x2e]] }
  0xb5   :  { %v104_v7 = vadd.f32 %v102_v62, %v61_v23  ;;  %v140_v29 = vmul.f32 %v139_v27, %v118_v8  ;;  %v125_v24 = vadd.f32 %v123_v16, %v86_v9  ;;  %v131_v25 = vadd.f32 %v129_v46, %v92_v12 }
  0xb6   :  { %746 = vrot.lane.b32.xlu1 %v1918_v10, %s3034_s27  ;;  %744 = vrot.lane.b32.xlu0 %v1928_v13, %s3034_s27  ;;  %v137_v26 = vadd.f32 %v135_v17, %v98_v56  ;;  %s2138_s27 = sld [smem:[#allocation6 + $0x74]]  ;;  %v130_v63 = vadd.f32 %v128_v4, %v91_v11  ;;  %v136_v5 = vadd.f32 %v134_v61, %v97_v19 }
  0xb7   :  { %v142_v8 = vadd.f32 %v140_v29, %v103_v6 }
  0xb8   :  { %v1993_v35 = vpop.permute.xlu1 %152  ;;  %v1995_v36 = vpop.permute.xlu0 %150 }
  0xb9   :  { %v158_v18 = vsel %vm156_vm2, %v1956_v20, %v1993_v35  ;;  %v143_v20 = vadd.f32 %v141_v60, %v104_v7  ;;  %v157_v27 = vsel %vm156_vm2, %v1958_v21, %v1995_v36 }
  0xba   :  { %778 = vrot.lane.b32.xlu1 %v1918_v10, %s3036_s16  ;;  %776 = vrot.lane.b32.xlu0 %v1928_v13, %s3036_s16  ;;  %v162_v22 = vmul.f32 %v160_v28, %v158_v18  ;;  %v168_v23 = vmul.f32 %v166_v32, %v158_v18  ;;  %v180_v16 = vmul.f32 %v178_v34, %v158_v18  ;;  %s2340_s16 = sld [smem:[#allocation6 + $0x55]] }
  0xbb   :  { %v161_v36 = vmul.f32 %v160_v28, %v157_v27  ;;  %v167_v61 = vmul.f32 %v166_v32, %v157_v27  ;;  %v173_v4 = vmul.f32 %v172_v33, %v157_v27 }
  0xbc   :  { %v186_v50 = vpop.permute.xlu1 %185  ;;  %v2032_v51 = vpop.permute.xlu0 %183  ;;  %v182_v56 = vadd.f32 %v180_v16, %v143_v20 }
  0xbd   :  { %v169_v6 = vadd.f32 %v167_v61, %v130_v63 }
  0xbe   :  { %784 = vrot.lane.b32.xlu1 %v1918_v10, %s3037_s12  ;;  %782 = vrot.lane.b32.xlu0 %v1928_v13, %s3037_s12  ;;  %s2330_s12 = sld [smem:[#allocation6 + $0x30]] }
  0xc0   :  { %v192_v31 = vpop.permute.xlu1 %191  ;;  %v190_v37 = vpop.permute.xlu0 %189 }
  0xc1   :  { %v197_v30 = vsel %vm195_vm3, %v186_v50, %v192_v31  ;;  %v124_v50 = vadd.f32 %v122_v14, %v85_v15  ;;  %v174_v31 = vmul.f32 %v172_v33, %v158_v18  ;;  %v196_v21 = vsel %vm195_vm3, %v2032_v51, %v190_v37 }
  0xc2   :  { %816 = vrot.lane.b32.xlu1 %v1918_v10, %s3043_s22  ;;  %814 = vrot.lane.b32.xlu0 %v1928_v13, %s3043_s22  ;;  %v201_v46 = vmul.f32 %v199_v38, %v197_v30  ;;  %v207_v14 = vmul.f32 %v205_v39, %v197_v30  ;;  %v164_v51 = vadd.f32 %v162_v22, %v125_v24 }
  0xc3   :  { %v170_v37 = vadd.f32 %v168_v23, %v131_v25  ;;  %v179_v15 = vmul.f32 %v178_v34, %v157_v27  ;;  %v213_v11 = vmul.f32 %v211_v40, %v197_v30  ;;  %v176_v9 = vadd.f32 %v174_v31, %v137_v26 }
  0xc4   :  { %v249_v1 = vpop.permute.xlu1 %248  ;;  %v2107_v0 = vpop.permute.xlu0 %246  ;;  %v219_v32 = vmul.f32 %v217_v41, %v197_v30  ;;  %v200_v33 = vmul.f32 %v199_v38, %v196_v21  ;;  %v206_v12 = vmul.f32 %v205_v39, %v196_v21  ;;  %v203_v60 = vadd.f32 %v201_v46, %v164_v51 }
  0xc5   :  { %v212_v18 = vmul.f32 %v211_v40, %v196_v21  ;;  %v218_v19 = vmul.f32 %v217_v41, %v196_v21  ;;  %v163_v34 = vadd.f32 %v161_v36, %v124_v50  ;;  %v209_v7 = vadd.f32 %v207_v14, %v170_v37 }
  0xc6   :  { %822 = vrot.lane.b32.xlu1 %v1918_v10, %s3046_s26  ;;  %820 = vrot.lane.b32.xlu0 %v1928_v13, %s3046_s26  ;;  %v175_v38 = vadd.f32 %v173_v4, %v136_v5  ;;  %v181_v39 = vadd.f32 %v179_v15, %v142_v8  ;;  %v215_v40 = vadd.f32 %v213_v11, %v176_v9  ;;  %v397_v25 = vstv %s2138_s27  ;;  %s2342_s27 = sld [smem:[#allocation6 + $0x79]] }
  0xc7   :  { %v221_v26 = vadd.f32 %v219_v32, %v182_v56  ;;  %v202_v30 = vadd.f32 %v200_v33, %v163_v34  ;;  %v208_v20 = vadd.f32 %v206_v12, %v169_v6  ;;  %v227_v27 = vadd.f32 %v2011_v42, %v203_v60 }
  0xc8   :  { %v255_v35 = vpop.permute.xlu1 %254  ;;  %v253_v62 = vpop.permute.xlu0 %252  ;;  %v214_v22 = vadd.f32 %v212_v18, %v175_v38  ;;  %v220_v23 = vadd.f32 %v218_v19, %v181_v39  ;;  %v233_v50 = vadd.f32 %v2014_v43, %v209_v7  ;;  %v239_v43 = vadd.f32 %v2017_v44, %v215_v40 }
  0xc9   :  { %v260_v29 = vsel %vm258_vm4, %v249_v1, %v255_v35  ;;  %v259_v1 = vsel %vm258_vm4, %v2107_v0, %v253_v62  ;;  %v245_v21 = vadd.f32 %v2028_v47, %v221_v26  ;;  %v226_v36 = vadd.f32 %v2020_v45, %v202_v30 }
  0xca   :  { %854 = vrot.lane.b32.xlu1 %v1918_v10, %s3047_s28  ;;  %852 = vrot.lane.b32.xlu0 %v1928_v13, %s3047_s28  ;;  %v264_v35 = vmul.f32 %v262_v48, %v260_v29  ;;  %v270_v63 = vmul.f32 %v268_v49, %v260_v29  ;;  %v276_v5 = vmul.f32 %v274_v52, %v260_v29  ;;  %v3052_v9 = vstv %s1968_s2  ;;  %s2258_s2 = sld [smem:[#allocation6 + $0x2d]] }
  0xcb   :  { %v282_v31 = vmul.f32 %v280_v53, %v260_v29  ;;  %v263_v0 = vmul.f32 %v262_v48, %v259_v1  ;;  %v269_v42 = vmul.f32 %v268_v49, %v259_v1  ;;  %v275_v62 = vmul.f32 %v274_v52, %v259_v1 }
  0xcc   :  { %v288_v17 = vpop.permute.xlu1 %287  ;;  %v286_v28 = vpop.permute.xlu0 %285  ;;  %v281_v8 = vmul.f32 %v280_v53, %v259_v1  ;;  %v232_v61 = vadd.f32 %v2037_v54, %v208_v20  ;;  %v266_v4 = vadd.f32 %v264_v35, %v227_v27  ;;  %v238_v14 = vadd.f32 %v2040_v55, %v214_v22 }
  0xcd   :  { %v244_v48 = vadd.f32 %v2046_v57, %v220_v23  ;;  %v272_v44 = vadd.f32 %v270_v63, %v233_v50  ;;  %v278_v47 = vadd.f32 %v276_v5, %v239_v43  ;;  %v284_v45 = vadd.f32 %v282_v31, %v245_v21 }
  0xce   :  { %860 = vrot.lane.b32.xlu1 %v1918_v10, %s3048_s1  ;;  %858 = vrot.lane.b32.xlu0 %v1928_v13, %s3048_s1  ;;  %v265_v53 = vadd.f32 %v263_v0, %v226_v36  ;;  %v271_v54 = vadd.f32 %v269_v42, %v232_v61  ;;  %v277_v55 = vadd.f32 %v275_v62, %v238_v14  ;;  %v3053_v33 = vstv %s1970_s24  ;;  %s2300_s24 = sld [smem:[#allocation6 + $0x52]] }
  0xcf   :  { %v283_v57 = vadd.f32 %v281_v8, %v244_v48  ;;  %v3055_v18 = vmov %v3052_v9  ;;  %v3056_v34 = vmov %v3053_v33  ;;  %v3057_v7 = vstv %s3051_s8  ;;  %s3076_s8 = smov 116  }
  0xd0   :  { %v294_v41 = vpop.permute.xlu1 %293  ;;  %v292_v24 = vpop.permute.xlu0 %291  ;;  %v3058_v38 = vstv %s1979_s29  ;;  %v3059_v40 = vstv %s1986_s6  ;;  %s2302_s29 = sld [smem:[#allocation6 + $0x76]]  ;;  %s3075_s6 = smov 12  }
  0xd1   :  { %v299_v49 = vsel %vm297_vm5, %v288_v17, %v294_v41  ;;  %v298_v52 = vsel %vm297_vm5, %v286_v28, %v292_v24  ;;  %v3060_v41 = vstv %s1988_s5  ;;  %v3062_v30 = vmov %v3058_v38  ;;  %s2312_s5 = sld [smem:[#allocation6 + $0x2f]] }
  0xd2   :  { %916 = vrot.lane.b32.xlu1 %v1918_v10, %s3049_s11  ;;  %914 = vrot.lane.b32.xlu0 %v1928_v13, %s3049_s11  ;;  %v303_v15 = vmul.f32 %v301_v58, %v299_v49  ;;  %v309_v11 = vmul.f32 %v307_v59, %v299_v49  ;;  %v315_v32 = vmul.f32 %v3052_v9, %v299_v49 }
  0xd3   :  { %v321_v12 = vmul.f32 %v3053_v33, %v299_v49  ;;  %v302_v56 = vmul.f32 %v301_v58, %v298_v52  ;;  %v308_v60 = vmul.f32 %v307_v59, %v298_v52  ;;  %v314_v19 = vmul.f32 %v3055_v18, %v298_v52 }
  0xd4   :  { %v327_v16 = vpop.permute.xlu1 %326  ;;  %v325_v46 = vpop.permute.xlu0 %324  ;;  %v320_v6 = vmul.f32 %v3056_v34, %v298_v52  ;;  %v3061_v59 = vmov %v3057_v7  ;;  %v305_v23 = vadd.f32 %v303_v15, %v266_v4  ;;  %v311_v27 = vadd.f32 %v309_v11, %v272_v44 }
  0xd5   :  { %v3063_v35 = vmov %v3059_v40  ;;  %v3064_v63 = vmov %v3060_v41  ;;  %v317_v31 = vadd.f32 %v315_v32, %v278_v47  ;;  %v323_v0 = vadd.f32 %v321_v12, %v284_v45 }
  0xd6   :  { %922 = vrot.lane.b32.xlu1 %v1918_v10, %s3050_s7  ;;  %920 = vrot.lane.b32.xlu0 %v1928_v13, %s3050_s7  ;;  %v304_v42 = vadd.f32 %v302_v56, %v265_v53  ;;  %v310_v62 = vadd.f32 %v308_v60, %v271_v54  ;;  %v316_v8 = vadd.f32 %v314_v19, %v277_v55  ;;  %v3066_v52 = vstv %s1998_s0  ;;  %s2317_s0 = sld [smem:[#allocation6 + $0x53]] }
  0xd7   :  { %v3067_v54 = vstv %s2004_s14  ;;  %v3070_v15 = vmov %v3066_v52  ;;  %s2319_s14 = sld [smem:[#allocation6 + $0x77]] }
  0xd8   :  { %v333_v51 = vpop.permute.xlu1 %332  ;;  %v331_v37 = vpop.permute.xlu0 %330 }
  0xd9   :  { %v338_v17 = vsel %vm336_vm6, %v327_v16, %v333_v51  ;;  %v337_v28 = vsel %vm336_vm6, %v325_v46, %v331_v37  ;;  %v322_v16 = vadd.f32 %v320_v6, %v283_v57  ;;  %v3068_v57 = vstv %s2006_s15  ;;  %s2328_s15 = sld [smem:[#allocation6 + $0xc]] }
  0xda   :  { %954 = vrot.lane.b32.xlu1 %v1918_v10, %s3054_s9  ;;  %v342_v29 = vmul.f32 %v3057_v7, %v338_v17  ;;  %v348_v39 = vmul.f32 %v3058_v38, %v338_v17  ;;  %952 = vrot.lane.b32.xlu0 %v1928_v13, %s3054_s9  ;;  %v354_v58 = vmul.f32 %v3059_v40, %v338_v17  ;;  %v433_v40 = vstv %s2262_s10  ;;  %s2353_s10 = sld [smem:[#allocation6 + $0x78]] }
  0xdb   :  { %v360_v24 = vmul.f32 %v3060_v41, %v338_v17  ;;  %v341_v26 = vmul.f32 %v3061_v59, %v337_v28  ;;  %v347_v20 = vmul.f32 %v3062_v30, %v337_v28  ;;  %v353_v50 = vmul.f32 %v3063_v35, %v337_v28 }
  0xdc   :  { %v366_v1 = vpop.permute.xlu1 %365  ;;  %v364_v22 = vpop.permute.xlu0 %363  ;;  %v359_v5 = vmul.f32 %v3064_v63, %v337_v28  ;;  %v344_v46 = vadd.f32 %v342_v29, %v305_v23  ;;  %v350_v43 = vadd.f32 %v348_v39, %v311_v27  ;;  %v356_v21 = vadd.f32 %v354_v58, %v317_v31 }
  0xdd   :  { %v362_v36 = vadd.f32 %v360_v24, %v323_v0  ;;  %v343_v61 = vadd.f32 %v341_v26, %v304_v42  ;;  %v349_v4 = vadd.f32 %v347_v20, %v310_v62  ;;  %v355_v49 = vadd.f32 %v353_v50, %v316_v8 }
  0xde   :  { %960 = vrot.lane.b32.xlu1 %v1918_v10, %s3065_s3  ;;  %958 = vrot.lane.b32.xlu0 %v1928_v13, %s3065_s3  ;;  %v361_v44 = vadd.f32 %v359_v5, %v322_v16  ;;  %v3071_v17 = vmov %v3067_v54  ;;  %v3072_v9 = vmov %v3068_v57  ;;  %v427_v39 = vstv %s2258_s2  ;;  %s2351_s2 = sld [smem:[#allocation6 + $0x54]] }
  0xdf   :  { %v439_v58 = vstv %s2264_s13  ;;  %s2364_s13 = sld [smem:[#allocation6 + $0xe]] }
  0xe0   :  { %v372_v14 = vpop.permute.xlu1 %371  ;;  %v370_v48 = vpop.permute.xlu0 %369 }
  0xe1   :  { %v377_v47 = vsel %vm375_vm7, %v366_v1, %v372_v14  ;;  %v376_v45 = vsel %vm375_vm7, %v364_v22, %v370_v48  ;;  %v2326_v14 = vld [vmem:[#allocation2 + $0x7] sm:$0x1] }
  0xe2   :  { %v381_v53 = vmul.f32 %v3066_v52, %v377_v47  ;;  %v387_v55 = vmul.f32 %v3067_v54, %v377_v47  ;;  %v393_v51 = vmul.f32 %v3068_v57, %v377_v47  ;;  %v399_v37 = vmul.f32 %v397_v25, %v377_v47  ;;  %992 = vrot.lane.b32.xlu1 %v1918_v10, %s3069_s17 }
  0xe3   :  { %v380_v11 = vmul.f32 %v3070_v15, %v376_v45  ;;  %v386_v28 = vmul.f32 %v3071_v17, %v376_v45  ;;  %v392_v32 = vmul.f32 %v3072_v9, %v376_v45  ;;  %v398_v33 = vmul.f32 %v397_v25, %v376_v45  ;;  %990 = vrot.lane.b32.xlu0 %v1928_v13, %s3069_s17 }
  0xe4   :  { %v383_v12 = vadd.f32 %v381_v53, %v344_v46  ;;  %v389_v56 = vadd.f32 %v387_v55, %v350_v43  ;;  %v395_v60 = vadd.f32 %v393_v51, %v356_v21  ;;  %v401_v18 = vadd.f32 %v399_v37, %v362_v36  ;;  %v409_v19 = vpop.permute.xlu1 %408  ;;  %v407_v34 = vpop.permute.xlu0 %406 }
  0xe5   :  { %v382_v6 = vadd.f32 %v380_v11, %v343_v61  ;;  %v388_v7 = vadd.f32 %v386_v28, %v349_v4  ;;  %v394_v29 = vadd.f32 %v392_v32, %v355_v49  ;;  %v400_v38 = vadd.f32 %v398_v33, %v361_v44 }
  0xe6   :  { %998 = vrot.lane.b32.xlu1 %v1918_v10, %s3073_s18  ;;  %v421_v25 = vstv %s2256_s25  ;;  %v459_v21 = vstv %s2291_s19  ;;  %v465_v36 = vstv %s2293_s20  ;;  %s3077_s25 = smov 4   ;;  %s2366_s19 = sld [smem:[#allocation6 + $0x32]] }
  0xe7   :  { %996 = vrot.lane.b32.xlu0 %v1928_v13, %s3073_s18  ;;  %v471_v61 = vstv %s2300_s24  ;;  %v477_v4 = vstv %s2302_s29  ;;  %s2372_s20 = sld [smem:[#allocation6 + $0x56]]  ;;  %s2374_s24 = sld [smem:[#allocation6 + $0x7a]] }
  0xe8   :  { %v415_v41 = vpop.permute.xlu1 %414  ;;  %v413_v24 = vpop.permute.xlu0 %412  ;;  %s3078_s29 = smov 115  }
  0xe9   :  { %v419_v59 = vsel %vm78_vm0, %v409_v19, %v415_v41  ;;  %v418_v26 = vsel %vm78_vm0, %v407_v34, %v413_v24  ;;  %v509_v19 = vstv %s2317_s0  ;;  %v515_v34 = vstv %s2319_s14  ;;  %s2412_s0 = sld [smem:[#allocation6 + $0x57]]  ;;  %s2414_s14 = sld [smem:[#allocation6 + $0x7b]] }
  0xea   :  { %v423_v30 = vmul.f32 %v421_v25, %v419_v59  ;;  %v429_v20 = vmul.f32 %v427_v39, %v419_v59  ;;  %v435_v1 = vmul.f32 %v433_v40, %v419_v59  ;;  %v441_v22 = vmul.f32 %v439_v58, %v419_v59  ;;  %1030 = vrot.lane.b32.xlu1 %v1918_v10, %s3074_s30 }
  0xeb   :  { %v422_v23 = vmul.f32 %v421_v25, %v418_v26  ;;  %v428_v27 = vmul.f32 %v427_v39, %v418_v26  ;;  %v434_v35 = vmul.f32 %v433_v40, %v418_v26  ;;  %v440_v50 = vmul.f32 %v439_v58, %v418_v26  ;;  %1028 = vrot.lane.b32.xlu0 %v1928_v13, %s3074_s30 }
  0xec   :  { %v425_v63 = vadd.f32 %v423_v30, %v383_v12  ;;  %v431_v5 = vadd.f32 %v429_v20, %v389_v56  ;;  %v437_v31 = vadd.f32 %v435_v1, %v395_v60  ;;  %v443_v0 = vadd.f32 %v441_v22, %v401_v18  ;;  %v447_v42 = vpop.permute.xlu1 %446  ;;  %v445_v62 = vpop.permute.xlu0 %444 }
  0xed   :  { %v424_v8 = vadd.f32 %v422_v23, %v382_v6  ;;  %v430_v16 = vadd.f32 %v428_v27, %v388_v7  ;;  %v436_v46 = vadd.f32 %v434_v35, %v394_v29  ;;  %v442_v43 = vadd.f32 %v440_v50, %v400_v38 }
  0xee   :  { %1036 = vrot.lane.b32.xlu1 %v1918_v10, %s3075_s6  ;;  %v2332_v10 = vld [vmem:[#allocation2 + $0x3] sm:$0x1]  ;;  %v497_v60 = vstv %s2310_s4  ;;  %v503_v18 = vstv %s2312_s5  ;;  %v535_v29 = vstv %s2328_s15  ;;  %s3079_s4 = smov 3   ;;  %s2406_s5 = sld [smem:[#allocation6 + $0xf]] }
  0xef   :  { %1034 = vrot.lane.b32.xlu0 %v1928_v13, %s3075_s6  ;;  %v541_v38 = vstv %s2330_s12  ;;  %v559_v25 = vstv %s2334_s21  ;;  %v565_v39 = vstv %s2336_s23  ;;  %s2434_s15 = sld [smem:[#allocation6 + $0x58]]  ;;  %s2436_s12 = sld [smem:[#allocation6 + $0x7c]] }
  0xf0   :  { %v453_v48 = vpop.permute.xlu1 %452  ;;  %v451_v49 = vpop.permute.xlu0 %450  ;;  %v571_v41 = vstv %s2340_s16  ;;  %v577_v24 = vstv %s2342_s27  ;;  %s2446_s21 = sld [smem:[#allocation6 + $0x35]]  ;;  %s2469_s16 = sld [smem:[#allocation6 + $0x36]] }
  0xf1   :  { %v457_v44 = vsel %vm117_vm1, %v447_v42, %v453_v48  ;;  %v456_v13 = vsel %vm117_vm1, %v445_v62, %v451_v49  ;;  %v560_v48 = vmul.f32 %v559_v25, %v1804_v3  ;;  %v566_v49 = vmul.f32 %v565_v39, %v1804_v3  ;;  %s2453_s23 = sld [smem:[#allocation6 + $0x7d]]  ;;  %s2478_s27 = sld [smem:[#allocation6 + $0x7e]] }
  0xf2   :  { %v461_v47 = vmul.f32 %v459_v21, %v457_v44  ;;  %v467_v45 = vmul.f32 %v465_v36, %v457_v44  ;;  %v473_v52 = vmul.f32 %v471_v61, %v457_v44  ;;  %v479_v53 = vmul.f32 %v477_v4, %v457_v44  ;;  %1072 = vrot.lane.b32.xlu1 %v2326_v14, %s3076_s8 }
  0xf3   :  { %v460_v54 = vmul.f32 %v459_v21, %v456_v13  ;;  %v466_v55 = vmul.f32 %v465_v36, %v456_v13  ;;  %v472_v57 = vmul.f32 %v471_v61, %v456_v13  ;;  %v478_v51 = vmul.f32 %v477_v4, %v456_v13  ;;  %1070 = vrot.lane.b32.xlu0 %v2332_v10, %s3076_s8  ;;  %s2491_s8 = sld [smem:[#allocation6 + $0x37]] }
  0xf4   :  { %v463_v37 = vadd.f32 %v461_v47, %v425_v63  ;;  %v469_v15 = vadd.f32 %v467_v45, %v431_v5  ;;  %v475_v11 = vadd.f32 %v473_v52, %v437_v31  ;;  %v481_v17 = vadd.f32 %v479_v53, %v443_v0  ;;  %v485_v28 = vpop.permute.xlu1 %484  ;;  %v483_v9 = vpop.permute.xlu0 %482 }
  0xf5   :  { %v462_v32 = vadd.f32 %v460_v54, %v424_v8  ;;  %v468_v33 = vadd.f32 %v466_v55, %v430_v16  ;;  %v474_v12 = vadd.f32 %v472_v57, %v436_v46  ;;  %v480_v56 = vadd.f32 %v478_v51, %v442_v43 }
  0xf6   :  { %1078 = vrot.lane.b32.xlu1 %v2326_v14, %s3077_s25  ;;  %v547_v46 = vstv %s2351_s2  ;;  %v553_v43 = vstv %s2353_s10  ;;  %v561_v21 = vmul.f32 %v559_v25, %v1802_v2  ;;  %v567_v36 = vmul.f32 %v565_v39, %v1802_v2  ;;  %s2500_s2 = sld [smem:[#allocation6 + $0x7f]]  ;;  %s2513_s10 = sld [smem:[#allocation6 + $0x38]] }
  0xf7   :  { %1076 = vrot.lane.b32.xlu0 %v2332_v10, %s3077_s25  ;;  %v573_v61 = vmul.f32 %v571_v41, %v1802_v2  ;;  %v579_v4 = vmul.f32 %v577_v24, %v1802_v2  ;;  %v597_v47 = vstv %s2364_s13  ;;  %v603_v45 = vstv %s2366_s19  ;;  %s2522_s13 = sld [smem:[#allocation6 + $0x80]]  ;;  %s2526_s19 = sld [smem:[#allocation6 + $0x15]] }
  0xf8   :  { %v491_v6 = vpop.permute.xlu1 %490  ;;  %v489_v7 = vpop.permute.xlu0 %488  ;;  %v572_v52 = vmul.f32 %v571_v41, %v1804_v3  ;;  %v578_v53 = vmul.f32 %v577_v24, %v1804_v3  ;;  %v609_v57 = vstv %s2372_s20  ;;  %v615_v51 = vstv %s2374_s24  ;;  %s2529_s20 = sld [smem:[#allocation6 + $0x39]]  ;;  %s2531_s24 = sld [smem:[#allocation6 + $0x16]] }
  0xf9   :  { %v495_v40 = vsel %vm156_vm2, %v485_v28, %v491_v6  ;;  %v494_v58 = vsel %vm156_vm2, %v483_v9, %v489_v7  ;;  %s2670_s25 = sld [smem:[#allocation6 + $0x66]] }
  0xfa   :  { %v499_v59 = vmul.f32 %v497_v60, %v495_v40  ;;  %v505_v26 = vmul.f32 %v503_v18, %v495_v40  ;;  %v511_v30 = vmul.f32 %v509_v19, %v495_v40  ;;  %v517_v20 = vmul.f32 %v515_v34, %v495_v40  ;;  %1110 = vrot.lane.b32.xlu1 %v2326_v14, %s3078_s29 }
  0xfb   :  { %v498_v1 = vmul.f32 %v497_v60, %v494_v58  ;;  %v504_v22 = vmul.f32 %v503_v18, %v494_v58  ;;  %v510_v23 = vmul.f32 %v509_v19, %v494_v58  ;;  %v516_v27 = vmul.f32 %v515_v34, %v494_v58  ;;  %1108 = vrot.lane.b32.xlu0 %v2332_v10, %s3078_s29  ;;  %s2533_s29 = sld [smem:[#allocation6 + $0x3a]] }
  0xfc   :  { %v501_v35 = vadd.f32 %v499_v59, %v463_v37  ;;  %v507_v50 = vadd.f32 %v505_v26, %v469_v15  ;;  %v513_v63 = vadd.f32 %v511_v30, %v475_v11  ;;  %v519_v5 = vadd.f32 %v517_v20, %v481_v17  ;;  %v523_v31 = vpop.permute.xlu1 %522  ;;  %v521_v0 = vpop.permute.xlu0 %520 }
  0xfd   :  { %v500_v42 = vadd.f32 %v498_v1, %v462_v32  ;;  %v506_v62 = vadd.f32 %v504_v22, %v468_v33  ;;  %v512_v8 = vadd.f32 %v510_v23, %v474_v12  ;;  %v518_v16 = vadd.f32 %v516_v27, %v480_v56 }
  0xfe   :  { %1116 = vrot.lane.b32.xlu1 %v2326_v14, %s3079_s4 }
  0xff   :  { %1114 = vrot.lane.b32.xlu0 %v2332_v10, %s3079_s4  ;;  %s2538_s4 = sld [smem:[#allocation6 + $0x82]] }
 0x100   :  { %v529_v44 = vpop.permute.xlu1 %528  ;;  %v527_v13 = vpop.permute.xlu0 %526 }
 0x101   :  { %v533_v54 = vsel %vm195_vm3, %v523_v31, %v529_v44  ;;  %v532_v55 = vsel %vm195_vm3, %v521_v0, %v527_v13 }
 0x102   :  { %v537_v37 = vmul.f32 %v535_v29, %v533_v54  ;;  %v543_v2 = vmul.f32 %v541_v38, %v533_v54  ;;  %v549_v15 = vmul.f32 %v547_v46, %v533_v54  ;;  %v555_v11 = vmul.f32 %v553_v43, %v533_v54  ;;  %1148 = vrot.lane.b32.xlu1 %v2326_v14, %s3043_s22 }
 0x103   :  { %v536_v17 = vmul.f32 %v535_v29, %v532_v55  ;;  %v542_v28 = vmul.f32 %v541_v38, %v532_v55  ;;  %v548_v9 = vmul.f32 %v547_v46, %v532_v55  ;;  %v554_v32 = vmul.f32 %v553_v43, %v532_v55  ;;  %1146 = vrot.lane.b32.xlu0 %v2332_v10, %s3043_s22  ;;  %s2408_s22 = sld [smem:[#allocation6 + $0x33]] }
 0x104   :  { %v539_v3 = vadd.f32 %v537_v37, %v501_v35  ;;  %v545_v33 = vadd.f32 %v543_v2, %v507_v50  ;;  %v551_v12 = vadd.f32 %v549_v15, %v513_v63  ;;  %v557_v56 = vadd.f32 %v555_v11, %v519_v5  ;;  %v585_v60 = vpop.permute.xlu1 %584  ;;  %v583_v18 = vpop.permute.xlu0 %582 }
 0x105   :  { %v538_v19 = vadd.f32 %v536_v17, %v500_v42  ;;  %v544_v34 = vadd.f32 %v542_v28, %v506_v62  ;;  %v550_v6 = vadd.f32 %v548_v9, %v512_v8  ;;  %v556_v7 = vadd.f32 %v554_v32, %v518_v16 }
 0x106   :  { %1154 = vrot.lane.b32.xlu1 %v2326_v14, %s3046_s26  ;;  %v563_v29 = vadd.f32 %v561_v21, %v539_v3  ;;  %v569_v38 = vadd.f32 %v567_v36, %v545_v33  ;;  %v575_v25 = vadd.f32 %v573_v61, %v551_v12  ;;  %v581_v39 = vadd.f32 %v579_v4, %v557_v56 }
 0x107   :  { %1152 = vrot.lane.b32.xlu0 %v2332_v10, %s3046_s26  ;;  %v562_v40 = vadd.f32 %v560_v48, %v538_v19  ;;  %v568_v58 = vadd.f32 %v566_v49, %v544_v34  ;;  %v574_v41 = vadd.f32 %v572_v52, %v550_v6  ;;  %v580_v24 = vadd.f32 %v578_v53, %v556_v7  ;;  %s2425_s26 = sld [smem:[#allocation6 + $0x10]] }
 0x108   :  { %v591_v59 = vpop.permute.xlu1 %590  ;;  %v589_v26 = vpop.permute.xlu0 %588  ;;  %v635_v61 = vstv %s2406_s5  ;;  %v647_v48 = vstv %s2412_s0  ;;  %v653_v49 = vstv %s2414_s14  ;;  %v685_v19 = vstv %s2434_s15  ;;  %s2544_s5 = sld [smem:[#allocation6 + $0x5d]]  ;;  %s2548_s0 = sld [smem:[#allocation6 + $0x17]] }
 0x109   :  { %v595_v30 = vsel %vm258_vm4, %v585_v60, %v591_v59  ;;  %v594_v20 = vsel %vm258_vm4, %v583_v18, %v589_v26  ;;  %v641_v4 = vstv %s2408_s22  ;;  %v691_v34 = vstv %s2436_s12  ;;  %s2546_s22 = sld [smem:[#allocation6 + $0x81]]  ;;  %s2550_s14 = sld [smem:[#allocation6 + $0x3b]] }
 0x10a   :  { %v599_v1 = vmul.f32 %v597_v47, %v595_v30  ;;  %v605_v22 = vmul.f32 %v603_v45, %v595_v30  ;;  %v611_v23 = vmul.f32 %v609_v57, %v595_v30  ;;  %v617_v27 = vmul.f32 %v615_v51, %v595_v30  ;;  %1186 = vrot.lane.b32.xlu1 %v2326_v14, %s3047_s28  ;;  %s2586_s15 = sld [smem:[#allocation6 + $0x18]]  ;;  %s2588_s12 = sld [smem:[#allocation6 + $0x3c]] }
 0x10b   :  { %v598_v35 = vmul.f32 %v597_v47, %v594_v20  ;;  %v604_v50 = vmul.f32 %v603_v45, %v594_v20  ;;  %v610_v63 = vmul.f32 %v609_v57, %v594_v20  ;;  %v616_v5 = vmul.f32 %v615_v51, %v594_v20  ;;  %1184 = vrot.lane.b32.xlu0 %v2332_v10, %s3047_s28  ;;  %s2427_s28 = sld [smem:[#allocation6 + $0x34]] }
 0x10c   :  { %v601_v31 = vadd.f32 %v599_v1, %v563_v29  ;;  %v607_v0 = vadd.f32 %v605_v22, %v569_v38  ;;  %v613_v42 = vadd.f32 %v611_v23, %v575_v25  ;;  %v619_v62 = vadd.f32 %v617_v27, %v581_v39  ;;  %v623_v8 = vpop.permute.xlu1 %622  ;;  %v621_v16 = vpop.permute.xlu0 %620 }
 0x10d   :  { %v600_v46 = vadd.f32 %v598_v35, %v562_v40  ;;  %v606_v43 = vadd.f32 %v604_v50, %v568_v58  ;;  %v612_v21 = vadd.f32 %v610_v63, %v574_v41  ;;  %v618_v36 = vadd.f32 %v616_v5, %v580_v24 }
 0x10e   :  { %1192 = vrot.lane.b32.xlu1 %v2326_v14, %s3048_s1  ;;  %v673_v60 = vstv %s2425_s26  ;;  %v717_v50 = vstv %s2446_s21  ;;  %v729_v5 = vstv %s2453_s23  ;;  %s2556_s26 = sld [smem:[#allocation6 + $0x5f]]  ;;  %s2600_s21 = sld [smem:[#allocation6 + $0x84]] }
 0x10f   :  { %1190 = vrot.lane.b32.xlu0 %v2332_v10, %s3048_s1  ;;  %s2444_s1 = sld [smem:[#allocation6 + $0x11]]  ;;  %s2606_s23 = sld [smem:[#allocation6 + $0x3d]] }
 0x110   :  { %v629_v44 = vpop.permute.xlu1 %628  ;;  %v627_v13 = vpop.permute.xlu0 %626 }
 0x111   :  { %v633_v47 = vsel %vm297_vm5, %v623_v8, %v629_v44  ;;  %v632_v45 = vsel %vm297_vm5, %v621_v16, %v627_v13  ;;  %v679_v18 = vstv %s2427_s28  ;;  %s2558_s28 = sld [smem:[#allocation6 + $0x83]] }
 0x112   :  { %v637_v52 = vmul.f32 %v635_v61, %v633_v47  ;;  %v643_v53 = vmul.f32 %v641_v4, %v633_v47  ;;  %v649_v54 = vmul.f32 %v647_v48, %v633_v47  ;;  %v655_v55 = vmul.f32 %v653_v49, %v633_v47  ;;  %1248 = vrot.lane.b32.xlu1 %v2326_v14, %s3049_s11 }
 0x113   :  { %v636_v57 = vmul.f32 %v635_v61, %v632_v45  ;;  %v642_v51 = vmul.f32 %v641_v4, %v632_v45  ;;  %v648_v37 = vmul.f32 %v647_v48, %v632_v45  ;;  %v654_v2 = vmul.f32 %v653_v49, %v632_v45  ;;  %1246 = vrot.lane.b32.xlu0 %v2332_v10, %s3049_s11  ;;  %s2451_s11 = sld [smem:[#allocation6 + $0x59]] }
 0x114   :  { %v639_v15 = vadd.f32 %v637_v52, %v601_v31  ;;  %v645_v11 = vadd.f32 %v643_v53, %v607_v0  ;;  %v651_v17 = vadd.f32 %v649_v54, %v613_v42  ;;  %v657_v28 = vadd.f32 %v655_v55, %v619_v62  ;;  %v661_v9 = vpop.permute.xlu1 %660  ;;  %v659_v32 = vpop.permute.xlu0 %658 }
 0x115   :  { %v638_v3 = vadd.f32 %v636_v57, %v600_v46  ;;  %v644_v33 = vadd.f32 %v642_v51, %v606_v43  ;;  %v650_v12 = vadd.f32 %v648_v37, %v612_v21  ;;  %v656_v56 = vadd.f32 %v654_v2, %v618_v36 }
 0x116   :  { %1254 = vrot.lane.b32.xlu1 %v2326_v14, %s3050_s7  ;;  %v711_v41 = vstv %s2444_s1  ;;  %v759_v51 = vstv %s2469_s16  ;;  %v771_v2 = vstv %s2478_s27  ;;  %s2598_s1 = sld [smem:[#allocation6 + $0x60]]  ;;  %s2612_s16 = sld [smem:[#allocation6 + $0x85]] }
 0x117   :  { %1252 = vrot.lane.b32.xlu0 %v2332_v10, %s3050_s7  ;;  %s2467_s7 = sld [smem:[#allocation6 + $0x12]]  ;;  %s2616_s27 = sld [smem:[#allocation6 + $0x3e]] }
 0x118   :  { %v667_v6 = vpop.permute.xlu1 %666  ;;  %v665_v29 = vpop.permute.xlu0 %664 }
 0x119   :  { %v671_v7 = vsel %vm336_vm6, %v661_v9, %v667_v6  ;;  %v670_v58 = vsel %vm336_vm6, %v659_v32, %v665_v29  ;;  %v723_v63 = vstv %s2451_s11  ;;  %s2604_s11 = sld [smem:[#allocation6 + $0x19]] }
 0x11a   :  { %v675_v38 = vmul.f32 %v673_v60, %v671_v7  ;;  %v681_v25 = vmul.f32 %v679_v18, %v671_v7  ;;  %v687_v39 = vmul.f32 %v685_v19, %v671_v7  ;;  %v693_v40 = vmul.f32 %v691_v34, %v671_v7  ;;  %1286 = vrot.lane.b32.xlu1 %v2326_v14, %s3054_s9 }
 0x11b   :  { %1284 = vrot.lane.b32.xlu0 %v2332_v10, %s3054_s9  ;;  %v674_v1 = vmul.f32 %v673_v60, %v670_v58  ;;  %v680_v22 = vmul.f32 %v679_v18, %v670_v58  ;;  %v686_v23 = vmul.f32 %v685_v19, %v670_v58  ;;  %v692_v27 = vmul.f32 %v691_v34, %v670_v58  ;;  %s2476_s9 = sld [smem:[#allocation6 + $0x5a]] }
 0x11c   :  { %v677_v24 = vadd.f32 %v675_v38, %v639_v15  ;;  %v683_v59 = vadd.f32 %v681_v25, %v645_v11  ;;  %v689_v26 = vadd.f32 %v687_v39, %v651_v17  ;;  %v695_v30 = vadd.f32 %v693_v40, %v657_v28  ;;  %v699_v20 = vpop.permute.xlu1 %698  ;;  %v697_v35 = vpop.permute.xlu0 %696 }
 0x11d   :  { %v676_v31 = vadd.f32 %v674_v1, %v638_v3  ;;  %v682_v0 = vadd.f32 %v680_v22, %v644_v33  ;;  %v688_v42 = vadd.f32 %v686_v23, %v650_v12  ;;  %v694_v62 = vadd.f32 %v692_v27, %v656_v56 }
 0x11e   :  { %1292 = vrot.lane.b32.xlu1 %v2326_v14, %s3065_s3  ;;  %v753_v48 = vstv %s2467_s7  ;;  %s2610_s7 = sld [smem:[#allocation6 + $0x61]] }
 0x11f   :  { %1290 = vrot.lane.b32.xlu0 %v2332_v10, %s3065_s3  ;;  %s2489_s3 = sld [smem:[#allocation6 + $0x13]] }
 0x120   :  { %v705_v8 = vpop.permute.xlu1 %704  ;;  %v703_v46 = vpop.permute.xlu0 %702 }
 0x121   :  { %v709_v16 = vsel %vm375_vm7, %v699_v20, %v705_v8  ;;  %v708_v4 = vsel %vm375_vm7, %v697_v35, %v703_v46  ;;  %v765_v37 = vstv %s2476_s9  ;;  %s2614_s9 = sld [smem:[#allocation6 + $0x1a]] }
 0x122   :  { %v713_v43 = vmul.f32 %v711_v41, %v709_v16  ;;  %v719_v21 = vmul.f32 %v717_v50, %v709_v16  ;;  %v725_v36 = vmul.f32 %v723_v63, %v709_v16  ;;  %v731_v61 = vmul.f32 %v729_v5, %v709_v16  ;;  %1324 = vrot.lane.b32.xlu1 %v2326_v14, %s3069_s17 }
 0x123   :  { %1322 = vrot.lane.b32.xlu0 %v2332_v10, %s3069_s17  ;;  %v712_v52 = vmul.f32 %v711_v41, %v708_v4  ;;  %v718_v53 = vmul.f32 %v717_v50, %v708_v4  ;;  %v724_v54 = vmul.f32 %v723_v63, %v708_v4  ;;  %v730_v55 = vmul.f32 %v729_v5, %v708_v4  ;;  %s2498_s17 = sld [smem:[#allocation6 + $0x5b]] }
 0x124   :  { %v715_v49 = vadd.f32 %v713_v43, %v677_v24  ;;  %v721_v44 = vadd.f32 %v719_v21, %v683_v59  ;;  %v727_v13 = vadd.f32 %v725_v36, %v689_v26  ;;  %v733_v47 = vadd.f32 %v731_v61, %v695_v30  ;;  %v741_v45 = vpop.permute.xlu1 %740  ;;  %v739_v57 = vpop.permute.xlu0 %738 }
 0x125   :  { %v714_v15 = vadd.f32 %v712_v52, %v676_v31  ;;  %v720_v11 = vadd.f32 %v718_v53, %v682_v0  ;;  %v726_v17 = vadd.f32 %v724_v54, %v688_v42  ;;  %v732_v28 = vadd.f32 %v730_v55, %v694_v62 }
 0x126   :  { %1330 = vrot.lane.b32.xlu1 %v2326_v14, %s3073_s18  ;;  %v791_v19 = vstv %s2489_s3  ;;  %v797_v24 = vstv %s2491_s8  ;;  %v809_v26 = vstv %s2500_s2  ;;  %s2618_s3 = sld [smem:[#allocation6 + $0x62]]  ;;  %s2620_s8 = sld [smem:[#allocation6 + $0x86]] }
 0x127   :  { %1328 = vrot.lane.b32.xlu0 %v2332_v10, %s3073_s18  ;;  %s2511_s18 = sld [smem:[#allocation6 + $0x14]]  ;;  %s2626_s2 = sld [smem:[#allocation6 + $0x3f]] }
 0x128   :  { %v747_v9 = vpop.permute.xlu1 %746  ;;  %v745_v3 = vpop.permute.xlu0 %744 }
 0x129   :  { %v751_v32 = vsel %vm78_vm0, %v741_v45, %v747_v9  ;;  %v750_v18 = vsel %vm78_vm0, %v739_v57, %v745_v3  ;;  %v803_v59 = vstv %s2498_s17  ;;  %v867_v57 = vstv %s2526_s19  ;;  %s2624_s17 = sld [smem:[#allocation6 + $0x1b]]  ;;  %s2638_s19 = sld [smem:[#allocation6 + $0x64]] }
 0x12a   :  { %v755_v33 = vmul.f32 %v753_v48, %v751_v32  ;;  %v761_v12 = vmul.f32 %v759_v51, %v751_v32  ;;  %v767_v56 = vmul.f32 %v765_v37, %v751_v32  ;;  %v773_v60 = vmul.f32 %v771_v2, %v751_v32  ;;  %1362 = vrot.lane.b32.xlu1 %v2326_v14, %s3074_s30 }
 0x12b   :  { %1360 = vrot.lane.b32.xlu0 %v2332_v10, %s3074_s30  ;;  %v754_v25 = vmul.f32 %v753_v48, %v750_v18  ;;  %v760_v39 = vmul.f32 %v759_v51, %v750_v18  ;;  %v766_v40 = vmul.f32 %v765_v37, %v750_v18  ;;  %v772_v58 = vmul.f32 %v771_v2, %v750_v18  ;;  %s2520_s30 = sld [smem:[#allocation6 + $0x5c]] }
 0x12c   :  { %v757_v34 = vadd.f32 %v755_v33, %v715_v49  ;;  %v763_v6 = vadd.f32 %v761_v12, %v721_v44  ;;  %v769_v7 = vadd.f32 %v767_v56, %v727_v13  ;;  %v775_v29 = vadd.f32 %v773_v60, %v733_v47  ;;  %v779_v38 = vpop.permute.xlu1 %778  ;;  %v777_v41 = vpop.permute.xlu0 %776 }
 0x12d   :  { %v756_v30 = vadd.f32 %v754_v25, %v714_v15  ;;  %v762_v20 = vadd.f32 %v760_v39, %v720_v11  ;;  %v768_v1 = vadd.f32 %v766_v40, %v726_v17  ;;  %v774_v22 = vadd.f32 %v772_v58, %v732_v28  ;;  %v1593_v39 = vld [vmem:[#allocation2 + $0x6] sm:$0x1] }
 0x12e   :  { %1368 = vrot.lane.b32.xlu1 %v2326_v14, %s3075_s6  ;;  %v829_v4 = vstv %s2511_s18  ;;  %v835_v48 = vstv %s2513_s10  ;;  %v847_v44 = vstv %s2522_s13  ;;  %s2630_s18 = sld [smem:[#allocation6 + $0x63]]  ;;  %s2632_s10 = sld [smem:[#allocation6 + $0x87]] }
 0x12f   :  { %1366 = vrot.lane.b32.xlu0 %v2332_v10, %s3075_s6  ;;  %s2536_s6 = sld [smem:[#allocation6 + $0x5e]]  ;;  %v873_v51 = vstv %s2529_s20  ;;  %v891_v37 = vstv %s2531_s24  ;;  %v897_v9 = vstv %s2533_s29  ;;  %s2636_s13 = sld [smem:[#allocation6 + $0x40]] }
 0x130   :  { %v785_v23 = vpop.permute.xlu1 %784  ;;  %v783_v35 = vpop.permute.xlu0 %782  ;;  %v909_v3 = vstv %s2538_s4  ;;  %v885_v25 = vstv %s2546_s22  ;;  %v893_v40 = vmul.f32 %v1593_v39, %v891_v37  ;;  %v899_v58 = vmul.f32 %v1593_v39, %v897_v9  ;;  %s2640_s20 = sld [smem:[#allocation6 + $0x88]]  ;;  %s2642_s24 = sld [smem:[#allocation6 + $0x1d]] }
 0x131   :  { %v789_v27 = vsel %vm117_vm1, %v779_v38, %v785_v23  ;;  %v788_v10 = vsel %vm117_vm1, %v777_v41, %v783_v35  ;;  %v841_v49 = vstv %s2520_s30  ;;  %v879_v38 = vstv %s2544_s5  ;;  %s2634_s30 = sld [smem:[#allocation6 + $0x1c]]  ;;  %s2644_s29 = sld [smem:[#allocation6 + $0x41]] }
 0x132   :  { %v793_v50 = vmul.f32 %v791_v19, %v789_v27  ;;  %v799_v63 = vmul.f32 %v797_v24, %v789_v27  ;;  %v805_v5 = vmul.f32 %v803_v59, %v789_v27  ;;  %v811_v31 = vmul.f32 %v809_v26, %v789_v27  ;;  %s2650_s4 = sld [smem:[#allocation6 + $0x89]]  ;;  %s2652_s5 = sld [smem:[#allocation6 + $0x1f]] }
 0x133   :  { %v792_v46 = vmul.f32 %v791_v19, %v788_v10  ;;  %v798_v43 = vmul.f32 %v797_v24, %v788_v10  ;;  %v804_v21 = vmul.f32 %v803_v59, %v788_v10  ;;  %v810_v36 = vmul.f32 %v809_v26, %v788_v10  ;;  %s2654_s22 = sld [smem:[#allocation6 + $0x43]] }
 0x134   :  { %v795_v0 = vadd.f32 %v793_v50, %v757_v34  ;;  %v801_v42 = vadd.f32 %v799_v63, %v763_v6  ;;  %v807_v62 = vadd.f32 %v805_v5, %v769_v7  ;;  %v813_v8 = vadd.f32 %v811_v31, %v775_v29  ;;  %v817_v16 = vpop.permute.xlu1 %816  ;;  %v815_v61 = vpop.permute.xlu0 %814  ;;  %v1594_v5 = vld [vmem:[#allocation2 + $0x2] sm:$0x1] }
 0x135   :  { %v794_v13 = vadd.f32 %v792_v46, %v756_v30  ;;  %v800_v47 = vadd.f32 %v798_v43, %v762_v20  ;;  %v806_v45 = vadd.f32 %v804_v21, %v768_v1  ;;  %v812_v52 = vadd.f32 %v810_v36, %v774_v22 }
 0x136   :  { %v903_v32 = vstv %s2536_s6  ;;  %v911_v1 = vmul.f32 %v1593_v39, %v909_v3  ;;  %v929_v22 = vstv %s2548_s0  ;;  %v935_v23 = vstv %s2550_s14  ;;  %s2648_s6 = sld [smem:[#allocation6 + $0x65]]  ;;  %s2656_s0 = sld [smem:[#allocation6 + $0x67]] }
 0x137   :  { %v905_v20 = vmul.f32 %v1593_v39, %v903_v32  ;;  %v941_v50 = vstv %s2556_s26  ;;  %v947_v63 = vstv %s2558_s28  ;;  %v892_v31 = vmul.f32 %v1594_v5, %v891_v37  ;;  %s2658_s14 = sld [smem:[#allocation6 + $0x8b]]  ;;  %s2662_s26 = sld [smem:[#allocation6 + $0x1e]] }
 0x138   :  { %v823_v53 = vpop.permute.xlu1 %822  ;;  %v821_v55 = vpop.permute.xlu0 %820  ;;  %v904_v46 = vmul.f32 %v1594_v5, %v903_v32  ;;  %v910_v43 = vmul.f32 %v1594_v5, %v909_v3  ;;  %3080 = sst [smem:[#allocation14_spill]] %s2650_s4  ;;  %s2664_s28 = sld [smem:[#allocation6 + $0x42]] }
 0x139   :  { %v827_v54 = vsel %vm156_vm2, %v817_v16, %v823_v53  ;;  %v826_v28 = vsel %vm156_vm2, %v815_v61, %v821_v55  ;;  %v898_v16 = vmul.f32 %v1594_v5, %v897_v9  ;;  %s2672_s4 = sld [smem:[#allocation6 + $0x8a]] }
 0x13a   :  { %v831_v2 = vmul.f32 %v829_v4, %v827_v54  ;;  %v837_v15 = vmul.f32 %v835_v48, %v827_v54  ;;  %v843_v11 = vmul.f32 %v841_v49, %v827_v54  ;;  %v849_v17 = vmul.f32 %v847_v44, %v827_v54 }
 0x13b   :  { %v830_v19 = vmul.f32 %v829_v4, %v826_v28  ;;  %v836_v34 = vmul.f32 %v835_v48, %v826_v28  ;;  %v842_v6 = vmul.f32 %v841_v49, %v826_v28  ;;  %v848_v7 = vmul.f32 %v847_v44, %v826_v28 }
 0x13c   :  { %v833_v33 = vadd.f32 %v831_v2, %v795_v0  ;;  %v839_v12 = vadd.f32 %v837_v15, %v801_v42  ;;  %v845_v56 = vadd.f32 %v843_v11, %v807_v62  ;;  %v851_v60 = vadd.f32 %v849_v17, %v813_v8  ;;  %v855_v18 = vpop.permute.xlu1 %854  ;;  %v853_v29 = vpop.permute.xlu0 %852 }
 0x13d   :  { %v832_v41 = vadd.f32 %v830_v19, %v794_v13  ;;  %v838_v24 = vadd.f32 %v836_v34, %v800_v47  ;;  %v844_v59 = vadd.f32 %v842_v6, %v806_v45  ;;  %v850_v26 = vadd.f32 %v848_v7, %v812_v52 }
 0x140   :  { %v861_v30 = vpop.permute.xlu1 %860  ;;  %v859_v35 = vpop.permute.xlu0 %858 }
 0x141   :  { %v865_v27 = vsel %vm195_vm3, %v855_v18, %v861_v30  ;;  %v864_v8 = vsel %vm195_vm3, %v853_v29, %v859_v35 }
 0x142   :  { %v869_v10 = vmul.f32 %v867_v57, %v865_v27  ;;  %v875_v0 = vmul.f32 %v873_v51, %v865_v27  ;;  %v881_v42 = vmul.f32 %v879_v38, %v865_v27  ;;  %v887_v62 = vmul.f32 %v885_v25, %v865_v27 }
 0x143   :  { %v868_v49 = vmul.f32 %v867_v57, %v864_v8  ;;  %v874_v44 = vmul.f32 %v873_v51, %v864_v8  ;;  %v880_v13 = vmul.f32 %v879_v38, %v864_v8  ;;  %v886_v47 = vmul.f32 %v885_v25, %v864_v8 }
 0x144   :  { %v871_v21 = vadd.f32 %v869_v10, %v833_v33  ;;  %v877_v36 = vadd.f32 %v875_v0, %v839_v12  ;;  %v883_v61 = vadd.f32 %v881_v42, %v845_v56  ;;  %v889_v4 = vadd.f32 %v887_v62, %v851_v60  ;;  %v917_v48 = vpop.permute.xlu1 %916  ;;  %v915_v45 = vpop.permute.xlu0 %914 }
 0x145   :  { %v870_v37 = vadd.f32 %v868_v49, %v832_v41  ;;  %v876_v2 = vadd.f32 %v874_v44, %v838_v24  ;;  %v882_v15 = vadd.f32 %v880_v13, %v844_v59  ;;  %v888_v11 = vadd.f32 %v886_v47, %v850_v26 }
 0x146   :  { %v895_v52 = vadd.f32 %v893_v40, %v871_v21  ;;  %v901_v53 = vadd.f32 %v899_v58, %v877_v36  ;;  %v907_v54 = vadd.f32 %v905_v20, %v883_v61  ;;  %v913_v55 = vadd.f32 %v911_v1, %v889_v4 }
 0x147   :  { %v894_v32 = vadd.f32 %v892_v31, %v870_v37  ;;  %v900_v3 = vadd.f32 %v898_v16, %v876_v2  ;;  %v906_v33 = vadd.f32 %v904_v46, %v882_v15  ;;  %v912_v60 = vadd.f32 %v910_v43, %v888_v11 }
 0x148   :  { %v923_v17 = vpop.permute.xlu1 %922  ;;  %v921_v9 = vpop.permute.xlu0 %920  ;;  %v979_v31 = vstv %s2598_s1  ;;  %v985_v10 = vstv %s2600_s21  ;;  %v1005_v0 = vstv %s2604_s11  ;;  %v1011_v42 = vstv %s2606_s23  ;;  %s2868_s1 = sld [smem:[#allocation6 + $0x68]]  ;;  %s2870_s21 = sld [smem:[#allocation6 + $0x8c]] }
 0x149   :  { %v927_v28 = vsel %vm258_vm4, %v917_v48, %v923_v17  ;;  %v926_v18 = vsel %vm258_vm4, %v915_v45, %v921_v9  ;;  %v1017_v62 = vstv %s2610_s7  ;;  %v1023_v8 = vstv %s2612_s16  ;;  %s2875_s11 = sld [smem:[#allocation6 + $0x21]]  ;;  %s2877_s23 = sld [smem:[#allocation6 + $0x45]] }
 0x14a   :  { %v931_v57 = vmul.f32 %v929_v22, %v927_v28  ;;  %v937_v51 = vmul.f32 %v935_v23, %v927_v28  ;;  %v943_v12 = vmul.f32 %v941_v50, %v927_v28  ;;  %v949_v56 = vmul.f32 %v947_v63, %v927_v28  ;;  %s2879_s7 = sld [smem:[#allocation6 + $0x69]]  ;;  %s2881_s16 = sld [smem:[#allocation6 + $0x8d]] }
 0x14b   :  { %v930_v38 = vmul.f32 %v929_v22, %v926_v18  ;;  %v936_v25 = vmul.f32 %v935_v23, %v926_v18  ;;  %v942_v39 = vmul.f32 %v941_v50, %v926_v18  ;;  %v948_v40 = vmul.f32 %v947_v63, %v926_v18 }
 0x14c   :  { %v2574_v19 = vadd.f32 %v931_v57, %v895_v52  ;;  %v2576_v34 = vadd.f32 %v937_v51, %v901_v53  ;;  %v2578_v6 = vadd.f32 %v943_v12, %v907_v54  ;;  %v2580_v7 = vadd.f32 %v949_v56, %v913_v55  ;;  %v2582_v29 = vpop.permute.xlu1 %954  ;;  %v2584_v58 = vpop.permute.xlu0 %952  ;;  %v1595_v51 = vld [vmem:[#allocation2 + $0x3] sm:$0x1] }
 0x14d   :  { %v2590_v41 = vadd.f32 %v930_v38, %v894_v32  ;;  %v2592_v24 = vadd.f32 %v936_v25, %v900_v3  ;;  %v2594_v59 = vadd.f32 %v942_v39, %v906_v33  ;;  %v2596_v26 = vadd.f32 %v948_v40, %v912_v60 }
 0x14e   :  { %v967_v50 = vstv %s2586_s15  ;;  %v973_v63 = vstv %s2588_s12  ;;  %v1043_v16 = vstv %s2614_s9  ;;  %v1049_v46 = vstv %s2616_s27  ;;  %s3081_s15 = sld [smem:[#allocation14_spill]]  ;;  %s2866_s12 = sld [smem:[#allocation6 + $0x44]] }
 0x14f   :  { %v1055_v43 = vstv %s2618_s3  ;;  %v1061_v21 = vstv %s2620_s8  ;;  %v1085_v61 = vstv %s2624_s17  ;;  %v1091_v4 = vstv %s2626_s2  ;;  %s2884_s9 = sld [smem:[#allocation6 + $0x22]]  ;;  %s2886_s27 = sld [smem:[#allocation6 + $0x46]] }
 0x150   :  { %v2602_v30 = vpop.permute.xlu1 %960  ;;  %v2608_v20 = vpop.permute.xlu0 %958  ;;  %v1097_v49 = vstv %s2630_s18  ;;  %v1103_v44 = vstv %s2632_s10  ;;  %v1123_v13 = vstv %s2634_s30  ;;  %v1129_v47 = vstv %s2636_s13  ;;  %s2888_s3 = sld [smem:[#allocation6 + $0x6a]]  ;;  %s2890_s8 = sld [smem:[#allocation6 + $0x8e]] }
 0x151   :  { %v1135_v45 = vstv %s2638_s19  ;;  %v1141_v52 = vstv %s2640_s20  ;;  %v1223_v54 = vstv %s2652_s5  ;;  %v1229_v37 = vstv %s2654_s22  ;;  %s2892_s17 = sld [smem:[#allocation6 + $0x23]]  ;;  %s2894_s2 = sld [smem:[#allocation6 + $0x47]] }
 0x152   :  { %v1235_v2 = vstv %s2656_s0  ;;  %v1241_v15 = vstv %s2658_s14  ;;  %v965_v11 = vsel %vm297_vm5, %v2582_v29, %v2602_v30  ;;  %v2714_v12 = vmul.f32 %v1223_v54, %v2326_v14  ;;  %s2896_s18 = sld [smem:[#allocation6 + $0x6b]]  ;;  %s2898_s10 = sld [smem:[#allocation6 + $0x8f]] }
 0x153   :  { %v964_v56 = vsel %vm297_vm5, %v2584_v58, %v2608_v20  ;;  %v2720_v60 = vmul.f32 %v1229_v37, %v2326_v14  ;;  %v2723_v18 = vmul.f32 %v1235_v2, %v2326_v14  ;;  %v2726_v29 = vmul.f32 %v1241_v15, %v2326_v14  ;;  %s1692_s30 = smov [#allocation9]  }
 0x154   :  { %v2622_v1 = vpop.permute.xlu1 %992  ;;  %v969_v38 = vmul.f32 %v967_v50, %v965_v11  ;;  %v975_v25 = vmul.f32 %v973_v63, %v965_v11  ;;  %v981_v39 = vmul.f32 %v979_v31, %v965_v11  ;;  %v2730_v57 = vmul.f32 %v1595_v51, %v1223_v54  ;;  %s1412_s13 = sshll.u32 %s1692_s30, 4  ;;  %s1413_s13 = int_to_ptr.vmem [resolvable:$true] %s1412_s13 }
 0x155   :  { %v2628_v22 = vpop.permute.xlu0 %990  ;;  %v2732_v58 = vmul.f32 %v1595_v51, %v1229_v37  ;;  %v2734_v20 = vmul.f32 %v1595_v51, %v1235_v2  ;;  %v2736_v33 = vmul.f32 %v1595_v51, %v1241_v15  ;;  %v987_v14 = vmul.f32 %v985_v10, %v965_v11  ;;  %s1642_s19 = scalar_lea.vmem %s1413_s13, 128  ;;  %p1647_p5 = scmp.lt.s32.totalorder %s1413_s13, %s1413_s13 }
 0x156   :  { %v968_v32 = vmul.f32 %v967_v50, %v964_v56  ;;  %v974_v9 = vmul.f32 %v973_v63, %v964_v56  ;;  %v986_v54 = vmul.f32 %v985_v10, %v964_v56  ;;  %v971_v37 = vadd.f32 %v969_v38, %v2574_v19  ;;  %p1643_p4 = scmp.ne.s32.totalorder %s1413_s13, %s1642_s19  ;;  %p1648_p6 = scmp.lt.s32.totalorder %s1642_s19, %s1642_s19 }
 0x157   :  { %v977_v2 = vadd.f32 %v975_v25, %v2576_v34  ;;  %v983_v15 = vadd.f32 %v981_v39, %v2578_v6  ;;  %v989_v11 = vadd.f32 %v987_v14, %v2580_v7 }
 0x158   :  { %v999_v23 = vpop.permute.xlu1 %998  ;;  %v970_v19 = vadd.f32 %v968_v32, %v2590_v41  ;;  %v976_v34 = vadd.f32 %v974_v9, %v2592_v24  ;;  %p1649_p7 = por %p1648_p6, %p1647_p5 }
 0x159   :  { %v2646_v27 = vpop.permute.xlu0 %996  ;;  %v1003_v40 = vsel %vm336_vm6, %v2622_v1, %v999_v23  ;;  %v980_v23 = vmul.f32 %v979_v31, %v964_v56 }
 0x15a   :  { %v1002_v28 = vsel %vm336_vm6, %v2628_v22, %v2646_v27  ;;  %v1007_v55 = vmul.f32 %v1005_v0, %v1003_v40  ;;  %v1013_v53 = vmul.f32 %v1011_v42, %v1003_v40  ;;  %v1019_v50 = vmul.f32 %v1017_v62, %v1003_v40  ;;  %p1650_p8 = pnand %p1649_p7, %p1643_p4 }
 0x15b   :  { %v1025_v63 = vmul.f32 %v1023_v8, %v1003_v40  ;;  %v1006_v22 = vmul.f32 %v1005_v0, %v1002_v28  ;;  %v1012_v27 = vmul.f32 %v1011_v42, %v1002_v28  ;;  %v1018_v6 = vmul.f32 %v1017_v62, %v1002_v28 }
 0x15c   :  { %v2660_v35 = vpop.permute.xlu1 %1030  ;;  %v982_v56 = vadd.f32 %v980_v23, %v2594_v59  ;;  %v988_v0 = vadd.f32 %v986_v54, %v2596_v26  ;;  %v1009_v42 = vadd.f32 %v1007_v55, %v971_v37  ;;  %v1015_v38 = vadd.f32 %v1013_v53, %v977_v2 }
 0x15d   :  { %v2668_v5 = vpop.permute.xlu0 %1028  ;;  %v1021_v62 = vadd.f32 %v1019_v50, %v983_v15  ;;  %v1008_v59 = vadd.f32 %v1006_v22, %v970_v19  ;;  %v1014_v26 = vadd.f32 %v1012_v27, %v976_v34 }
 0x15e   :  { %v1020_v55 = vadd.f32 %v1018_v6, %v982_v56 }
 0x160   :  { %v1037_v36 = vpop.permute.xlu1 %1036 }
 0x161   :  { %v2686_v48 = vpop.permute.xlu0 %1034  ;;  %v1041_v31 = vsel %vm375_vm7, %v2660_v35, %v1037_v36  ;;  %v1024_v35 = vmul.f32 %v1023_v8, %v1002_v28  ;;  %v1027_v36 = vadd.f32 %v1025_v63, %v989_v11 }
 0x162   :  { %v1045_v7 = vmul.f32 %v1043_v16, %v1041_v31  ;;  %v1051_v41 = vmul.f32 %v1049_v46, %v1041_v31  ;;  %v1040_v24 = vsel %vm375_vm7, %v2668_v5, %v2686_v48  ;;  %v1057_v8 = vmul.f32 %v1055_v43, %v1041_v31 }
 0x163   :  { %v1063_v28 = vmul.f32 %v1061_v21, %v1041_v31  ;;  %v1044_v5 = vmul.f32 %v1043_v16, %v1040_v24  ;;  %v1050_v48 = vmul.f32 %v1049_v46, %v1040_v24  ;;  %v1056_v25 = vmul.f32 %v1055_v43, %v1040_v24 }
 0x164   :  { %v2703_v17 = vpop.permute.xlu1 %1072  ;;  %v1026_v40 = vadd.f32 %v1024_v35, %v988_v0  ;;  %v1047_v14 = vadd.f32 %v1045_v7, %v1009_v42  ;;  %v1053_v23 = vadd.f32 %v1051_v41, %v1015_v38  ;;  %v1062_v54 = vmul.f32 %v1061_v21, %v1040_v24 }
 0x165   :  { %v2708_v3 = vpop.permute.xlu0 %1070  ;;  %v1059_v43 = vadd.f32 %v1057_v8, %v1021_v62  ;;  %v1065_v2 = vadd.f32 %v1063_v28, %v1027_v36  ;;  %v1046_v21 = vadd.f32 %v1044_v5, %v1008_v59  ;;  %v1052_v50 = vadd.f32 %v1050_v48, %v1014_v26 }
 0x166   :  { %v1058_v63 = vadd.f32 %v1056_v25, %v1020_v55  ;;  %v1064_v27 = vadd.f32 %v1062_v54, %v1026_v40  ;;  %v3083_v8 = vstv %s2644_s29  ;;  %v3085_v48 = vstv %s3081_s15 }
 0x168   :  { %v1079_v30 = vpop.permute.xlu1 %1078 }
 0x169   :  { %v1077_v1 = vpop.permute.xlu0 %1076  ;;  %v1083_v9 = vsel %vm78_vm0, %v2703_v17, %v1079_v30 }
 0x16a   :  { %v1082_v39 = vsel %vm78_vm0, %v2708_v3, %v1077_v1  ;;  %v1087_v17 = vmul.f32 %v1085_v61, %v1083_v9  ;;  %v1093_v30 = vmul.f32 %v1091_v4, %v1083_v9  ;;  %v1099_v16 = vmul.f32 %v1097_v49, %v1083_v9 }
 0x16b   :  { %v1105_v46 = vmul.f32 %v1103_v44, %v1083_v9  ;;  %v1086_v3 = vmul.f32 %v1085_v61, %v1082_v39  ;;  %v1092_v1 = vmul.f32 %v1091_v4, %v1082_v39  ;;  %v1098_v31 = vmul.f32 %v1097_v49, %v1082_v39 }
 0x16c   :  { %v1111_v10 = vpop.permute.xlu1 %1110  ;;  %v1104_v11 = vmul.f32 %v1103_v44, %v1082_v39  ;;  %v1089_v19 = vadd.f32 %v1087_v17, %v1047_v14  ;;  %v1095_v4 = vadd.f32 %v1093_v30, %v1053_v23  ;;  %v1101_v34 = vadd.f32 %v1099_v16, %v1059_v43 }
 0x16d   :  { %v1109_v51 = vpop.permute.xlu0 %1108  ;;  %v1107_v6 = vadd.f32 %v1105_v46, %v1065_v2  ;;  %v1094_v0 = vadd.f32 %v1092_v1, %v1052_v50  ;;  %v1100_v41 = vadd.f32 %v1098_v31, %v1058_v63  ;;  %v3087_v17 = vmov %v3083_v8 }
 0x16e   :  { %v1106_v24 = vadd.f32 %v1104_v11, %v1064_v27  ;;  %v3090_v11 = vstv %s2662_s26 }
 0x170   :  { %v1117_v53 = vpop.permute.xlu1 %1116 }
 0x171   :  { %v1115_v32 = vpop.permute.xlu0 %1114  ;;  %v1121_v22 = vsel %vm117_vm1, %v1111_v10, %v1117_v53  ;;  %v1088_v10 = vadd.f32 %v1086_v3, %v1046_v21  ;;  %v3082_v53 = vstv %s2642_s24 }
 0x172   :  { %v1120_v61 = vsel %vm117_vm1, %v1109_v51, %v1115_v32  ;;  %v1125_v42 = vmul.f32 %v1123_v13, %v1121_v22  ;;  %v1131_v51 = vmul.f32 %v1129_v47, %v1121_v22  ;;  %v1137_v38 = vmul.f32 %v1135_v45, %v1121_v22 }
 0x173   :  { %v1143_v35 = vmul.f32 %v1141_v52, %v1121_v22  ;;  %v1124_v7 = vmul.f32 %v1123_v13, %v1120_v61  ;;  %v1130_v62 = vmul.f32 %v1129_v47, %v1120_v61  ;;  %v1136_v59 = vmul.f32 %v1135_v45, %v1120_v61 }
 0x174   :  { %v1149_v37 = vpop.permute.xlu1 %1148  ;;  %v1142_v26 = vmul.f32 %v1141_v52, %v1120_v61  ;;  %v1127_v32 = vadd.f32 %v1125_v42, %v1089_v19  ;;  %v3084_v13 = vstv %s2648_s6  ;;  %v3086_v47 = vmov %v3082_v53 }
 0x175   :  { %v1147_v15 = vpop.permute.xlu0 %1146  ;;  %v1133_v14 = vadd.f32 %v1131_v51, %v1095_v4  ;;  %v1139_v23 = vadd.f32 %v1137_v38, %v1101_v34  ;;  %v1145_v45 = vadd.f32 %v1143_v35, %v1107_v6  ;;  %v1126_v54 = vadd.f32 %v1124_v7, %v1088_v10 }
 0x176   :  { %v1132_v52 = vadd.f32 %v1130_v62, %v1094_v0  ;;  %v3088_v16 = vmov %v3084_v13  ;;  %v1138_v2 = vadd.f32 %v1136_v59, %v1100_v41  ;;  %v1144_v3 = vadd.f32 %v1142_v26, %v1106_v24 }
 0x177   :  { %v3091_v19 = vstv %s2664_s28  ;;  %v3092_v34 = vstv %s2670_s25  ;;  %v3094_v24 = vmov %v3090_v11  ;;  %s2864_s25 = sld [smem:[#allocation6 + $0x20]] }
 0x178   :  { %v1155_v56 = vpop.permute.xlu1 %1154  ;;  %v3096_v26 = vmov %v3092_v34 }
 0x179   :  { %v1159_v49 = vsel %vm156_vm2, %v1149_v37, %v1155_v56  ;;  %v1153_v44 = vpop.permute.xlu0 %1152  ;;  %v3089_v37 = vmov %v3085_v48  ;;  %v3093_v56 = vstv %s2672_s4 }
 0x17a   :  { %v1158_v36 = vsel %vm156_vm2, %v1147_v15, %v1153_v44  ;;  %v1163_v55 = vmul.f32 %v3082_v53, %v1159_v49  ;;  %v1169_v28 = vmul.f32 %v3083_v8, %v1159_v49  ;;  %v1175_v5 = vmul.f32 %v3084_v13, %v1159_v49 }
 0x17b   :  { %v1181_v25 = vmul.f32 %v3085_v48, %v1159_v49  ;;  %v1162_v39 = vmul.f32 %v3086_v47, %v1158_v36  ;;  %v1168_v30 = vmul.f32 %v3087_v17, %v1158_v36  ;;  %v1174_v46 = vmul.f32 %v3088_v16, %v1158_v36 }
 0x17c   :  { %v1187_v9 = vpop.permute.xlu1 %1186  ;;  %v1180_v43 = vmul.f32 %v3089_v37, %v1158_v36  ;;  %v1165_v1 = vadd.f32 %v1163_v55, %v1127_v32  ;;  %v1171_v15 = vadd.f32 %v1169_v28, %v1133_v14  ;;  %v1177_v50 = vadd.f32 %v1175_v5, %v1139_v23 }
 0x17d   :  { %v1185_v40 = vpop.permute.xlu0 %1184  ;;  %v1183_v63 = vadd.f32 %v1181_v25, %v1145_v45  ;;  %v1164_v22 = vadd.f32 %v1162_v39, %v1126_v54  ;;  %v1170_v0 = vadd.f32 %v1168_v30, %v1132_v52  ;;  %v1176_v42 = vadd.f32 %v1174_v46, %v1138_v2 }
 0x17e   :  { %v1182_v49 = vadd.f32 %v1180_v43, %v1144_v3  ;;  %v3095_v36 = vmov %v3091_v19  ;;  %v3097_v55 = vmov %v3093_v56  ;;  %v1267_v23 = vstv %s2866_s12 }
 0x17f   :  { %v1273_v45 = vstv %s2868_s1  ;;  %v1279_v54 = vstv %s2870_s21  ;;  %v1299_v16 = vstv %s2875_s11  ;;  %v1305_v46 = vstv %s2877_s23 }
 0x180   :  { %v1193_v21 = vpop.permute.xlu1 %1192  ;;  %v1311_v37 = vstv %s2879_s7  ;;  %v1317_v43 = vstv %s2881_s16  ;;  %v1337_v2 = vstv %s2884_s9  ;;  %v1343_v3 = vstv %s2886_s27 }
 0x181   :  { %v1197_v27 = vsel %vm195_vm3, %v1187_v9, %v1193_v21  ;;  %v1191_v31 = vpop.permute.xlu0 %1190 }
 0x182   :  { %v1201_v61 = vmul.f32 %v3090_v11, %v1197_v27  ;;  %v1207_v4 = vmul.f32 %v3091_v19, %v1197_v27  ;;  %v1213_v6 = vmul.f32 %v3092_v34, %v1197_v27  ;;  %v1219_v10 = vmul.f32 %v3093_v56, %v1197_v27 }
 0x183   :  { %v1196_v44 = vsel %vm195_vm3, %v1185_v40, %v1191_v31  ;;  %v1349_v11 = vstv %s2888_s3  ;;  %v1381_v34 = vstv %s2894_s2 }
 0x184   :  { %v1203_v51 = vadd.f32 %v1201_v61, %v1165_v1  ;;  %v1209_v38 = vadd.f32 %v1207_v4, %v1171_v15  ;;  %v1215_v35 = vadd.f32 %v1213_v6, %v1177_v50  ;;  %v1221_v7 = vadd.f32 %v1219_v10, %v1183_v63  ;;  %v1249_v41 = vpop.permute.xlu1 %1248 }
 0x185   :  { %v1200_v62 = vmul.f32 %v3094_v24, %v1196_v44  ;;  %v1206_v59 = vmul.f32 %v3095_v36, %v1196_v44  ;;  %v1212_v53 = vmul.f32 %v3096_v26, %v1196_v44  ;;  %v1218_v8 = vmul.f32 %v3097_v55, %v1196_v44  ;;  %v1247_v28 = vpop.permute.xlu0 %1246 }
 0x186   :  { %v2853_v9 = vadd.f32 %v2714_v12, %v1203_v51  ;;  %v2856_v32 = vadd.f32 %v2720_v60, %v1209_v38  ;;  %v2859_v13 = vadd.f32 %v2723_v18, %v1215_v35  ;;  %v2862_v5 = vadd.f32 %v2726_v29, %v1221_v7 }
 0x187   :  { %v1202_v48 = vadd.f32 %v1200_v62, %v1164_v22  ;;  %v1208_v25 = vadd.f32 %v1206_v59, %v1170_v0  ;;  %v1214_v47 = vadd.f32 %v1212_v53, %v1176_v42  ;;  %v1220_v39 = vadd.f32 %v1218_v8, %v1182_v49 }
 0x188   :  { %v1255_v12 = vpop.permute.xlu1 %1254  ;;  %v1355_v61 = vstv %s2890_s8  ;;  %v1375_v4 = vstv %s2892_s17  ;;  %v1387_v6 = vstv %s2896_s18  ;;  %v1393_v42 = vstv %s2898_s10 }
 0x189   :  { %v1253_v60 = vpop.permute.xlu0 %1252  ;;  %v1226_v18 = vadd.f32 %v2730_v57, %v1202_v48  ;;  %v1232_v40 = vadd.f32 %v2732_v58, %v1208_v25  ;;  %v1238_v29 = vadd.f32 %v2734_v20, %v1214_v47  ;;  %v1244_v14 = vadd.f32 %v2736_v33, %v1220_v39 }
 0x18a   :  { %v1261_v33 = vstv %s2864_s25  ;;  %v1259_v52 = vsel %vm258_vm4, %v1249_v41, %v1255_v12  ;;  %v1258_v30 = vsel %vm258_vm4, %v1247_v28, %v1253_v60 }
 0x18b   :  { %v1263_v1 = vmul.f32 %v1261_v33, %v1259_v52  ;;  %v1269_v15 = vmul.f32 %v1267_v23, %v1259_v52  ;;  %v1275_v21 = vmul.f32 %v1273_v45, %v1259_v52  ;;  %v1281_v50 = vmul.f32 %v1279_v54, %v1259_v52 }
 0x18c   :  { %v1287_v57 = vpop.permute.xlu1 %1286  ;;  %v1262_v22 = vmul.f32 %v1261_v33, %v1258_v30  ;;  %v1268_v27 = vmul.f32 %v1267_v23, %v1258_v30  ;;  %v1274_v56 = vmul.f32 %v1273_v45, %v1258_v30  ;;  %v1280_v10 = vmul.f32 %v1279_v54, %v1258_v30 }
 0x18d   :  { %v1285_v58 = vpop.permute.xlu0 %1284  ;;  %v1265_v49 = vadd.f32 %v1263_v1, %v2853_v9  ;;  %v1271_v44 = vadd.f32 %v1269_v15, %v2856_v32  ;;  %v1277_v51 = vadd.f32 %v1275_v21, %v2859_v13  ;;  %v1283_v38 = vadd.f32 %v1281_v50, %v2862_v5 }
 0x18e   :  { %v1264_v7 = vadd.f32 %v1262_v22, %v1226_v18  ;;  %v1270_v41 = vadd.f32 %v1268_v27, %v1232_v40  ;;  %v1276_v8 = vadd.f32 %v1274_v56, %v1238_v29  ;;  %v1282_v28 = vadd.f32 %v1280_v10, %v1244_v14 }
 0x190   :  { %v1293_v20 = vpop.permute.xlu1 %1292 }
 0x191   :  { %v1291_v17 = vpop.permute.xlu0 %1290  ;;  %v1297_v19 = vsel %vm297_vm5, %v1287_v57, %v1293_v20 }
 0x192   :  { %v1296_v0 = vsel %vm297_vm5, %v1285_v58, %v1291_v17  ;;  %v1301_v24 = vmul.f32 %v1299_v16, %v1297_v19  ;;  %v1307_v59 = vmul.f32 %v1305_v46, %v1297_v19  ;;  %v1313_v26 = vmul.f32 %v1311_v37, %v1297_v19 }
 0x193   :  { %v1319_v53 = vmul.f32 %v1317_v43, %v1297_v19  ;;  %v1300_v55 = vmul.f32 %v1299_v16, %v1296_v0  ;;  %v1306_v9 = vmul.f32 %v1305_v46, %v1296_v0  ;;  %v1312_v13 = vmul.f32 %v1311_v37, %v1296_v0 }
 0x194   :  { %v1325_v63 = vpop.permute.xlu1 %1324  ;;  %v1318_v48 = vmul.f32 %v1317_v43, %v1296_v0  ;;  %v1303_v39 = vadd.f32 %v1301_v24, %v1265_v49  ;;  %v1309_v57 = vadd.f32 %v1307_v59, %v1271_v44  ;;  %v1315_v58 = vadd.f32 %v1313_v26, %v1277_v51 }
 0x195   :  { %v1323_v31 = vpop.permute.xlu0 %1322  ;;  %v1321_v33 = vadd.f32 %v1319_v53, %v1283_v38  ;;  %v1302_v29 = vadd.f32 %v1300_v55, %v1264_v7  ;;  %v1308_v14 = vadd.f32 %v1306_v9, %v1270_v41  ;;  %v1314_v54 = vadd.f32 %v1312_v13, %v1276_v8 }
 0x196   :  { %v1320_v52 = vadd.f32 %v1318_v48, %v1282_v28 }
 0x198   :  { %v1331_v35 = vpop.permute.xlu1 %1330 }
 0x199   :  { %v1335_v62 = vsel %vm336_vm6, %v1325_v63, %v1331_v35  ;;  %v1329_v36 = vpop.permute.xlu0 %1328 }
 0x19a   :  { %v1334_v32 = vsel %vm336_vm6, %v1323_v31, %v1329_v36  ;;  %v1339_v5 = vmul.f32 %v1337_v2, %v1335_v62  ;;  %v1345_v25 = vmul.f32 %v1343_v3, %v1335_v62  ;;  %v1351_v12 = vmul.f32 %v1349_v11, %v1335_v62 }
 0x19b   :  { %v1357_v60 = vmul.f32 %v1355_v61, %v1335_v62  ;;  %v1338_v18 = vmul.f32 %v1337_v2, %v1334_v32  ;;  %v1344_v20 = vmul.f32 %v1343_v3, %v1334_v32  ;;  %v1350_v23 = vmul.f32 %v1349_v11, %v1334_v32 }
 0x19c   :  { %v1363_v47 = vpop.permute.xlu1 %1362  ;;  %v1356_v45 = vmul.f32 %v1355_v61, %v1334_v32  ;;  %v1341_v17 = vadd.f32 %v1339_v5, %v1303_v39  ;;  %v1347_v30 = vadd.f32 %v1345_v25, %v1309_v57  ;;  %v1353_v46 = vadd.f32 %v1351_v12, %v1315_v58 }
 0x19d   :  { %v1361_v40 = vpop.permute.xlu0 %1360  ;;  %v1359_v37 = vadd.f32 %v1357_v60, %v1321_v33  ;;  %v1340_v43 = vadd.f32 %v1338_v18, %v1302_v29  ;;  %v1346_v63 = vadd.f32 %v1344_v20, %v1308_v14  ;;  %v1352_v22 = vadd.f32 %v1350_v23, %v1314_v54 }
 0x19e   :  { %v1358_v27 = vadd.f32 %v1356_v45, %v1320_v52 }
 0x1a0   :  { %v1369_v16 = vpop.permute.xlu1 %1368 }
 0x1a1   :  { %v1373_v2 = vsel %vm375_vm7, %v1363_v47, %v1369_v16  ;;  %v1367_v1 = vpop.permute.xlu0 %1366 }
 0x1a2   :  { %v1377_v15 = vmul.f32 %v1375_v4, %v1373_v2  ;;  %v1383_v3 = vmul.f32 %v1381_v34, %v1373_v2  ;;  %v1389_v21 = vmul.f32 %v1387_v6, %v1373_v2  ;;  %v1395_v50 = vmul.f32 %v1393_v42, %v1373_v2 }
 0x1a3   :  { %v1372_v31 = vsel %vm375_vm7, %v1361_v40, %v1367_v1 }
 0x1a4   :  { %v1379_v11 = vadd.f32 %v1377_v15, %v1341_v17  ;;  %v1385_v61 = vadd.f32 %v1383_v3, %v1347_v30  ;;  %v1391_v19 = vadd.f32 %v1389_v21, %v1353_v46  ;;  %v1397_v56 = vadd.f32 %v1395_v50, %v1359_v37 }
 0x1a5   :  { %v1376_v10 = vmul.f32 %v1375_v4, %v1372_v31  ;;  %v1382_v0 = vmul.f32 %v1381_v34, %v1372_v31  ;;  %v1388_v49 = vmul.f32 %v1387_v6, %v1372_v31  ;;  %v1394_v44 = vmul.f32 %v1393_v42, %v1372_v31 }
 0x1a6   :  { %1400 = vst.msk [vmem:[#allocation9 + $0x4] sm:$0x1] %vm1398_vm8, %v1379_v11  ;;  %1402 = vst.msk [vmem:[#allocation9 + $0x5] sm:$0x1] %vm1398_vm8, %v1385_v61 }
 0x1a7   :  { %1404 = vst.msk [vmem:[#allocation9 + $0x6] sm:$0x1] %vm1398_vm8, %v1391_v19  ;;  %1406 = vst.msk [vmem:[#allocation9 + $0x7] sm:$0x1] %vm1398_vm8, %v1397_v56  ;;  %v1378_v51 = vadd.f32 %v1376_v10, %v1340_v43  ;;  %v1384_v38 = vadd.f32 %v1382_v0, %v1346_v63  ;;  %v1390_v35 = vadd.f32 %v1388_v49, %v1352_v22 }
 0x1a8   :  { %v1396_v7 = vadd.f32 %v1394_v44, %v1358_v27 }
 0x1a9   :  { %1399 = vst.msk [vmem:[#allocation9] sm:$0x1] %vm1398_vm8, %v1378_v51  ;;  %1401 = vst.msk [vmem:[#allocation9 + $0x1] sm:$0x1] %vm1398_vm8, %v1384_v38 }
 0x1aa   :  { %1403 = vst.msk [vmem:[#allocation9 + $0x2] sm:$0x1] %vm1398_vm8, %v1390_v35  ;;  %1405 = vst.msk [vmem:[#allocation9 + $0x3] sm:$0x1] %vm1398_vm8, %v1396_v7 }
 0x1ab   :  { %1653 = shalt.err (!%p1650_p8)
}
 0x1ac   :  { %s3098_s29 = sld [smem:[#allocation22_spill]] }
 0x1b2   :  { %s1654_s6 = scalar_lea.hbm %s3098_s29, 128 }
 0x1b3   :  { %p1655_p9 = scmp.ne.s32.totalorder %s3098_s29, %s1654_s6  ;;  %p1658_p10 = scmp.lt.u32.totalorder %s1654_s6, %s3098_s29 }
 0x1b5   :  { %p1660_p11 = pnand %p1658_p10, %p1655_p9 }
 0x1b7   :  { %1663 = shalt.err (!%p1660_p11)
}
 0x1b8   :  { %s3099_s14 = smov 4   ;;  %s3100_s26 = smov 64  }
 0x1b9   :  { %1418 = dma.vmem_to_hbm [thread:$0]  %s1413_s13, 128, %s3098_s29, [#allocation4], %s3100_s26, %s3100_s26, %s3099_s14  }
 0x1ba   :  { %1670 = dma.done.wait [#allocation4], 128  }
 0x1bb   :  { %1671 = vsyncadd [#allocation4], 4294967168 }
 0x1bc   :  { %1422 = vsyncpa [#allocation3], 1 }
 0x1bd   :  { %1423 = vsyncpa [#allocation4], 1 }
 0x1be   :  { %1424 = vsyncpa [#allocation5], 1 }
 0x1bf   :  { %1425 = vsyncpa [#allocation8], 1 }

</bundles_post_ra>
